<compile_context>
chip_gen: v6e
topology: v6e:2x2x1
jax: 0.10.0
libtpu: 0.0.40
codegen_flags: <defaults>
</compile_context>

<pallas_src>
import jax
import jax.numpy as jnp
from jax.experimental import pallas as pl
from jax.experimental.pallas import tpu as pltpu

# ---------------- model hyper-parameters (small, consistent with the module) ----
VOCAB = 64          # synthetic vocab (stand-in for tokenizer.vocab_size)
EMB = 32            # embedding_size
HID = 32            # hidden_dim
LAYERS = 2          # num_layers (kernel specialized to 2: wavefront interleave)
CLASSES = 4         # num_classes
BATCH = 2
SEQ = 8
BP = 8              # batch padded to the fp32 sublane count
G4 = 4 * HID        # 128 = gate width (exactly one vreg of lanes)
OUT_PAD = 128       # lane-dense logits width (CLASSES padded 4 -> 128)

assert LAYERS == 2
assert BATCH <= BP


# ---------------- Pallas kernel --------------------------------------------------
def lstm2_fc_kernel(x0g_ref, w_ih1_ref, w_hh0_ref, w_hh1_ref, b1_ref,
                    w_fc_ref, b_fc_ref, out_ref):
    # x0g_ref : (SEQ*BP, 4H) f32  layer-0 gate pre-activations (x@W_ih0 + b0),
    #                             time-major, batch-padded, tile-aligned rows
    # w_ih1   : (H, 4H) bf16      w_hh0/w_hh1 : (H, 4H) bf16
    # b1      : (1, 4H) f32       w_fc : (H, OUT_PAD) bf16   b_fc : (1, OUT_PAD) f32
    # out     : (BP, OUT_PAD) f32
    w_ih1 = w_ih1_ref[...]
    w_hh0 = w_hh0_ref[...]
    w_hh1 = w_hh1_ref[...]
    b1 = jnp.broadcast_to(b1_ref[...], (BP, G4))     # hoisted (no per-step bcast)
    x0g = x0g_ref[...]                               # (64,128) f32 = 8 vregs

    h0 = jnp.zeros((BP, HID), jnp.float32)
    c0 = jnp.zeros((BP, HID), jnp.float32)
    h1 = jnp.zeros((BP, HID), jnp.float32)
    c1 = jnp.zeros((BP, HID), jnp.float32)

    def cell(gates, c):
        # sigmoid(x) = 0.5 * (1 + tanh(x/2)): one EUP pass instead of exp+recip.
        sig = 0.5 * (jnp.tanh(0.5 * gates) + 1.0)
        th = jnp.tanh(gates)
        i_g = sig[:, 0 * HID:1 * HID]
        f_g = sig[:, 1 * HID:2 * HID]
        g_g = th[:, 2 * HID:3 * HID]
        o_g = sig[:, 3 * HID:4 * HID]
        c_new = f_g * c + i_g * g_g                  # f32 VPU
        h_new = o_g * jnp.tanh(c_new)                # f32 VPU + EUP
        return h_new, c_new

    # Fully unrolled time loop, wavefront interleave of the two layers: the
    # scheduler can overlap layer-0 step t+1 with layer-1 step t (independent).
    for t in range(SEQ):
        g0 = x0g[t * BP:(t + 1) * BP, :] + jnp.dot(
            h0.astype(jnp.bfloat16), w_hh0, preferred_element_type=jnp.float32)
        h0, c0 = cell(g0, c0)

        g1 = (jnp.dot(h0.astype(jnp.bfloat16), w_ih1,
                      preferred_element_type=jnp.float32)
              + jnp.dot(h1.astype(jnp.bfloat16), w_hh1,
                        preferred_element_type=jnp.float32)
              + b1)
        h1, c1 = cell(g1, c1)

    # lstm_output[:, -1, :] == h1 after the final time step; bf16 MXU FC with a
    # lane-dense (128-wide) output store.
    logits = jnp.dot(h1.astype(jnp.bfloat16), w_fc_ref[...],
                     preferred_element_type=jnp.float32) + b_fc_ref[...]
    out_ref[...] = logits.astype(out_ref.dtype)


# ---------------- wrapper ---------------------------------------------------------
def lstm_classifier_forward(tokens, params):
    emb_table, w_ih, w_hh, b, w_fc, b_fc = params   # f32 master weights

    # Fuse layer-0 projection + bias into the embedding table (f32, exact:
    # gather(emb) @ W == gather(emb @ W) row-wise).
    g0_table = emb_table @ w_ih[0] + b[0]                       # (V, 4H) f32
    x0g = g0_table[tokens]                                      # (B, T, 4H)
    x0g = jnp.transpose(x0g, (1, 0, 2))                         # (T, B, 4H)
    x0g = jnp.pad(x0g, ((0, 0), (0, BP - BATCH), (0, 0)))       # pad batch 2 -> 8
    x0g2d = x0g.reshape(SEQ * BP, G4)                           # tile-aligned rows

    # bf16 MXU operands for the in-kernel matmuls.
    w_ih1 = w_ih[1].astype(jnp.bfloat16)                        # (H, 4H)
    w_hh0 = w_hh[0].astype(jnp.bfloat16)                        # (H, 4H)
    w_hh1 = w_hh[1].astype(jnp.bfloat16)                        # (H, 4H)
    b1 = b[1]                                                   # (1, 4H) f32

    # Lane-dense FC: pad logits width 4 -> 128.
    w_fc_p = jnp.zeros((HID, OUT_PAD), jnp.bfloat16)
    w_fc_p = w_fc_p.at[:, :CLASSES].set(w_fc.astype(jnp.bfloat16))
    b_fc_p = jnp.zeros((1, OUT_PAD), jnp.float32).at[:, :CLASSES].set(b_fc)

    vmem = pl.BlockSpec(memory_space=pltpu.MemorySpace.VMEM)
    out = pl.pallas_call(
        lstm2_fc_kernel,
        out_shape=jax.ShapeDtypeStruct((BP, OUT_PAD), jnp.float32),
        in_specs=[vmem] * 7,
        out_specs=vmem,
    )(x0g2d, w_ih1, w_hh0, w_hh1, b1, w_fc_p, b_fc_p)
    return out[:BATCH, :CLASSES]                                # drop padding


# ---------------- pure-JAX reference (f32, for correctness check) ----------------
def lstm_classifier_ref(tokens, params):
    emb_table, w_ih, w_hh, b, w_fc, b_fc = params
    x = emb_table[tokens]                                       # (B, T, E) f32
    bsz = tokens.shape[0]
    for layer in range(LAYERS):
        h = jnp.zeros((bsz, HID), jnp.float32)
        c = jnp.zeros((bsz, HID), jnp.float32)
        outs = []
        for t in range(SEQ):
            gates = x[:, t, :] @ w_ih[layer] + h @ w_hh[layer] + b[layer]
            i_g = jax.nn.sigmoid(gates[:, 0 * HID:1 * HID])
            f_g = jax.nn.sigmoid(gates[:, 1 * HID:2 * HID])
            g_g = jnp.tanh(gates[:, 2 * HID:3 * HID])
            o_g = jax.nn.sigmoid(gates[:, 3 * HID:4 * HID])
            c = f_g * c + i_g * g_g
            h = o_g * jnp.tanh(c)
            outs.append(h)
        x = jnp.stack(outs, axis=1)
    return x[:, -1, :] @ w_fc + b_fc


# ---------------- deterministic parameter init ------------------------------------
def init_params(key):
    ks = jax.random.split(key, 7)
    scale = 1.0 / jnp.sqrt(HID)
    emb_table = jax.random.normal(ks[0], (VOCAB, EMB), jnp.float32) * 0.1
    # stacked, pre-transposed LSTM weights (gate order i, f, g, o), E == HID
    w_ih = jax.random.uniform(ks[1], (LAYERS, EMB, 4 * HID), jnp.float32,
                              -scale, scale)
    w_hh = jax.random.uniform(ks[2], (LAYERS, HID, 4 * HID), jnp.float32,
                              -scale, scale)
    b_ih = jax.random.uniform(ks[3], (LAYERS, 1, 4 * HID), jnp.float32,
                              -scale, scale)
    b_hh = jax.random.uniform(ks[4], (LAYERS, 1, 4 * HID), jnp.float32,
                              -scale, scale)
    b = b_ih + b_hh                                  # exact PyTorch equivalent
    w_fc = jax.random.uniform(ks[5], (HID, CLASSES), jnp.float32, -scale, scale)
    b_fc = jax.random.uniform(ks[6], (1, CLASSES), jnp.float32, -scale, scale)
    return (emb_table, w_ih, w_hh, b, w_fc, b_fc)    # f32 masters


if __name__ == "__main__":
    key = jax.random.PRNGKey(0)
    k_tok, k_par = jax.random.split(key)
    tokens = jax.random.randint(k_tok, (BATCH, SEQ), 0, VOCAB, dtype=jnp.int32)
    params = init_params(k_par)

    logits = jax.jit(lstm_classifier_forward)(tokens, params)
    jax.block_until_ready(logits)

    ref = lstm_classifier_ref(tokens, params)
    assert logits.shape == (BATCH, CLASSES)
    # bf16 MXU operands in the kernel vs f32 reference -> 2e-2 tolerance.
    assert jnp.allclose(logits, ref, rtol=2e-2, atol=2e-2), (logits, ref)
    print("KERNEL_OK")
</pallas_src>

<mosaic_0001>
module attributes {stable_mosaic.version = 11 : i64} {
  func.func @lstm2_fc_kernel(%arg0: memref<64x128xf32, #tpu.memory_space<vmem>>, %arg1: memref<32x128xbf16, #tpu.memory_space<vmem>>, %arg2: memref<32x128xbf16, #tpu.memory_space<vmem>>, %arg3: memref<32x128xbf16, #tpu.memory_space<vmem>>, %arg4: memref<1x128xf32, #tpu.memory_space<vmem>>, %arg5: memref<32x128xbf16, #tpu.memory_space<vmem>>, %arg6: memref<1x128xf32, #tpu.memory_space<vmem>>, %arg7: memref<8x128xf32, #tpu.memory_space<vmem>>) attributes {dimension_semantics = [], scalar_prefetch = 0 : i64, scratch_operands = 0 : i64, tpu.core_type = #tpu.core_type<tc>} {
    %c0 = arith.constant 0 : index
    %c0_0 = arith.constant 0 : index
    %0 = vector.load %arg1[%c0, %c0_0] : memref<32x128xbf16, #tpu.memory_space<vmem>>, vector<32x128xbf16>
    %c0_1 = arith.constant 0 : index
    %c0_2 = arith.constant 0 : index
    %1 = vector.load %arg2[%c0_1, %c0_2] : memref<32x128xbf16, #tpu.memory_space<vmem>>, vector<32x128xbf16>
    %c0_3 = arith.constant 0 : index
    %c0_4 = arith.constant 0 : index
    %2 = vector.load %arg3[%c0_3, %c0_4] : memref<32x128xbf16, #tpu.memory_space<vmem>>, vector<32x128xbf16>
    %c0_5 = arith.constant 0 : index
    %c0_6 = arith.constant 0 : index
    %3 = vector.load %arg4[%c0_5, %c0_6] : memref<1x128xf32, #tpu.memory_space<vmem>>, vector<1x128xf32>
    %4 = vector.shape_cast %3 : vector<1x128xf32> to vector<1x128xf32>
    %5 = vector.broadcast %4 : vector<1x128xf32> to vector<8x128xf32>
    %c0_7 = arith.constant 0 : index
    %c0_8 = arith.constant 0 : index
    %6 = vector.load %arg0[%c0_7, %c0_8] : memref<64x128xf32, #tpu.memory_space<vmem>>, vector<64x128xf32>
    %cst = arith.constant 0.000000e+00 : f32
    %7 = vector.broadcast %cst : f32 to vector<8x32xf32>
    %cst_9 = arith.constant 0.000000e+00 : f32
    %8 = vector.broadcast %cst_9 : f32 to vector<8x32xf32>
    %cst_10 = arith.constant 0.000000e+00 : f32
    %9 = vector.broadcast %cst_10 : f32 to vector<8x32xf32>
    %cst_11 = arith.constant 0.000000e+00 : f32
    %10 = vector.broadcast %cst_11 : f32 to vector<8x32xf32>
    %11 = vector.extract_strided_slice %6 {offsets = [0, 0], sizes = [8, 128], strides = [1, 1]} : vector<64x128xf32> to vector<8x128xf32>
    %12 = arith.truncf %7 : vector<8x32xf32> to vector<8x32xbf16>
    %cst_12 = arith.constant dense<0.000000e+00> : vector<8x128xf32>
    %13 = tpu.matmul %12, %1, %cst_12 {dimension_numbers = #tpu.dot_dimension_numbers<[1], [0], [0], [1], [0, 0, 1, 1], [], []>} : vector<8x32xbf16>, vector<32x128xbf16>, vector<8x128xf32> -> vector<8x128xf32>
    %14 = arith.addf %11, %13 : vector<8x128xf32>
    %cst_13 = arith.constant 5.000000e-01 : f32
    %15 = vector.broadcast %cst_13 : f32 to vector<8x128xf32>
    %16 = arith.mulf %15, %14 : vector<8x128xf32>
    %17 = math.tanh %16 : vector<8x128xf32>
    %cst_14 = arith.constant 1.000000e+00 : f32
    %18 = vector.broadcast %cst_14 : f32 to vector<8x128xf32>
    %19 = arith.addf %17, %18 : vector<8x128xf32>
    %cst_15 = arith.constant 5.000000e-01 : f32
    %20 = vector.broadcast %cst_15 : f32 to vector<8x128xf32>
    %21 = arith.mulf %20, %19 : vector<8x128xf32>
    %22 = math.tanh %14 : vector<8x128xf32>
    %23 = vector.extract_strided_slice %21 {offsets = [0, 0], sizes = [8, 32], strides = [1, 1]} : vector<8x128xf32> to vector<8x32xf32>
    %24 = vector.extract_strided_slice %21 {offsets = [0, 32], sizes = [8, 32], strides = [1, 1]} : vector<8x128xf32> to vector<8x32xf32>
    %25 = vector.extract_strided_slice %22 {offsets = [0, 64], sizes = [8, 32], strides = [1, 1]} : vector<8x128xf32> to vector<8x32xf32>
    %26 = vector.extract_strided_slice %21 {offsets = [0, 96], sizes = [8, 32], strides = [1, 1]} : vector<8x128xf32> to vector<8x32xf32>
    %27 = arith.mulf %24, %8 : vector<8x32xf32>
    %28 = arith.mulf %23, %25 : vector<8x32xf32>
    %29 = arith.addf %27, %28 : vector<8x32xf32>
    %30 = math.tanh %29 : vector<8x32xf32>
    %31 = arith.mulf %26, %30 : vector<8x32xf32>
    %32 = arith.truncf %31 : vector<8x32xf32> to vector<8x32xbf16>
    %cst_16 = arith.constant dense<0.000000e+00> : vector<8x128xf32>
    %33 = tpu.matmul %32, %0, %cst_16 {dimension_numbers = #tpu.dot_dimension_numbers<[1], [0], [0], [1], [0, 0, 1, 1], [], []>} : vector<8x32xbf16>, vector<32x128xbf16>, vector<8x128xf32> -> vector<8x128xf32>
    %34 = arith.truncf %9 : vector<8x32xf32> to vector<8x32xbf16>
    %cst_17 = arith.constant dense<0.000000e+00> : vector<8x128xf32>
    %35 = tpu.matmul %34, %2, %cst_17 {dimension_numbers = #tpu.dot_dimension_numbers<[1], [0], [0], [1], [0, 0, 1, 1], [], []>} : vector<8x32xbf16>, vector<32x128xbf16>, vector<8x128xf32> -> vector<8x128xf32>
    %36 = arith.addf %33, %35 : vector<8x128xf32>
    %37 = arith.addf %36, %5 : vector<8x128xf32>
    %cst_18 = arith.constant 5.000000e-01 : f32
    %38 = vector.broadcast %cst_18 : f32 to vector<8x128xf32>
    %39 = arith.mulf %38, %37 : vector<8x128xf32>
    %40 = math.tanh %39 : vector<8x128xf32>
    %cst_19 = arith.constant 1.000000e+00 : f32
    %41 = vector.broadcast %cst_19 : f32 to vector<8x128xf32>
    %42 = arith.addf %40, %41 : vector<8x128xf32>
    %cst_20 = arith.constant 5.000000e-01 : f32
    %43 = vector.broadcast %cst_20 : f32 to vector<8x128xf32>
    %44 = arith.mulf %43, %42 : vector<8x128xf32>
    %45 = math.tanh %37 : vector<8x128xf32>
    %46 = vector.extract_strided_slice %44 {offsets = [0, 0], sizes = [8, 32], strides = [1, 1]} : vector<8x128xf32> to vector<8x32xf32>
    %47 = vector.extract_strided_slice %44 {offsets = [0, 32], sizes = [8, 32], strides = [1, 1]} : vector<8x128xf32> to vector<8x32xf32>
    %48 = vector.extract_strided_slice %45 {offsets = [0, 64], sizes = [8, 32], strides = [1, 1]} : vector<8x128xf32> to vector<8x32xf32>
    %49 = vector.extract_strided_slice %44 {offsets = [0, 96], sizes = [8, 32], strides = [1, 1]} : vector<8x128xf32> to vector<8x32xf32>
    %50 = arith.mulf %47, %10 : vector<8x32xf32>
    %51 = arith.mulf %46, %48 : vector<8x32xf32>
    %52 = arith.addf %50, %51 : vector<8x32xf32>
    %53 = math.tanh %52 : vector<8x32xf32>
    %54 = arith.mulf %49, %53 : vector<8x32xf32>
    %55 = vector.extract_strided_slice %6 {offsets = [8, 0], sizes = [8, 128], strides = [1, 1]} : vector<64x128xf32> to vector<8x128xf32>
    %56 = arith.truncf %31 : vector<8x32xf32> to vector<8x32xbf16>
    %cst_21 = arith.constant dense<0.000000e+00> : vector<8x128xf32>
    %57 = tpu.matmul %56, %1, %cst_21 {dimension_numbers = #tpu.dot_dimension_numbers<[1], [0], [0], [1], [0, 0, 1, 1], [], []>} : vector<8x32xbf16>, vector<32x128xbf16>, vector<8x128xf32> -> vector<8x128xf32>
    %58 = arith.addf %55, %57 : vector<8x128xf32>
    %cst_22 = arith.constant 5.000000e-01 : f32
    %59 = vector.broadcast %cst_22 : f32 to vector<8x128xf32>
    %60 = arith.mulf %59, %58 : vector<8x128xf32>
    %61 = math.tanh %60 : vector<8x128xf32>
    %cst_23 = arith.constant 1.000000e+00 : f32
    %62 = vector.broadcast %cst_23 : f32 to vector<8x128xf32>
    %63 = arith.addf %61, %62 : vector<8x128xf32>
    %cst_24 = arith.constant 5.000000e-01 : f32
    %64 = vector.broadcast %cst_24 : f32 to vector<8x128xf32>
    %65 = arith.mulf %64, %63 : vector<8x128xf32>
    %66 = math.tanh %58 : vector<8x128xf32>
    %67 = vector.extract_strided_slice %65 {offsets = [0, 0], sizes = [8, 32], strides = [1, 1]} : vector<8x128xf32> to vector<8x32xf32>
    %68 = vector.extract_strided_slice %65 {offsets = [0, 32], sizes = [8, 32], strides = [1, 1]} : vector<8x128xf32> to vector<8x32xf32>
    %69 = vector.extract_strided_slice %66 {offsets = [0, 64], sizes = [8, 32], strides = [1, 1]} : vector<8x128xf32> to vector<8x32xf32>
    %70 = vector.extract_strided_slice %65 {offsets = [0, 96], sizes = [8, 32], strides = [1, 1]} : vector<8x128xf32> to vector<8x32xf32>
    %71 = arith.mulf %68, %29 : vector<8x32xf32>
    %72 = arith.mulf %67, %69 : vector<8x32xf32>
    %73 = arith.addf %71, %72 : vector<8x32xf32>
    %74 = math.tanh %73 : vector<8x32xf32>
    %75 = arith.mulf %70, %74 : vector<8x32xf32>
    %76 = arith.truncf %75 : vector<8x32xf32> to vector<8x32xbf16>
    %cst_25 = arith.constant dense<0.000000e+00> : vector<8x128xf32>
    %77 = tpu.matmul %76, %0, %cst_25 {dimension_numbers = #tpu.dot_dimension_numbers<[1], [0], [0], [1], [0, 0, 1, 1], [], []>} : vector<8x32xbf16>, vector<32x128xbf16>, vector<8x128xf32> -> vector<8x128xf32>
    %78 = arith.truncf %54 : vector<8x32xf32> to vector<8x32xbf16>
    %cst_26 = arith.constant dense<0.000000e+00> : vector<8x128xf32>
    %79 = tpu.matmul %78, %2, %cst_26 {dimension_numbers = #tpu.dot_dimension_numbers<[1], [0], [0], [1], [0, 0, 1, 1], [], []>} : vector<8x32xbf16>, vector<32x128xbf16>, vector<8x128xf32> -> vector<8x128xf32>
    %80 = arith.addf %77, %79 : vector<8x128xf32>
    %81 = arith.addf %80, %5 : vector<8x128xf32>
    %cst_27 = arith.constant 5.000000e-01 : f32
    %82 = vector.broadcast %cst_27 : f32 to vector<8x128xf32>
    %83 = arith.mulf %82, %81 : vector<8x128xf32>
    %84 = math.tanh %83 : vector<8x128xf32>
    %cst_28 = arith.constant 1.000000e+00 : f32
    %85 = vector.broadcast %cst_28 : f32 to vector<8x128xf32>
    %86 = arith.addf %84, %85 : vector<8x128xf32>
    %cst_29 = arith.constant 5.000000e-01 : f32
    %87 = vector.broadcast %cst_29 : f32 to vector<8x128xf32>
    %88 = arith.mulf %87, %86 : vector<8x128xf32>
    %89 = math.tanh %81 : vector<8x128xf32>
    %90 = vector.extract_strided_slice %88 {offsets = [0, 0], sizes = [8, 32], strides = [1, 1]} : vector<8x128xf32> to vector<8x32xf32>
    %91 = vector.extract_strided_slice %88 {offsets = [0, 32], sizes = [8, 32], strides = [1, 1]} : vector<8x128xf32> to vector<8x32xf32>
    %92 = vector.extract_strided_slice %89 {offsets = [0, 64], sizes = [8, 32], strides = [1, 1]} : vector<8x128xf32> to vector<8x32xf32>
    %93 = vector.extract_strided_slice %88 {offsets = [0, 96], sizes = [8, 32], strides = [1, 1]} : vector<8x128xf32> to vector<8x32xf32>
    %94 = arith.mulf %91, %52 : vector<8x32xf32>
    %95 = arith.mulf %90, %92 : vector<8x32xf32>
    %96 = arith.addf %94, %95 : vector<8x32xf32>
    %97 = math.tanh %96 : vector<8x32xf32>
    %98 = arith.mulf %93, %97 : vector<8x32xf32>
    %99 = vector.extract_strided_slice %6 {offsets = [16, 0], sizes = [8, 128], strides = [1, 1]} : vector<64x128xf32> to vector<8x128xf32>
    %100 = arith.truncf %75 : vector<8x32xf32> to vector<8x32xbf16>
    %cst_30 = arith.constant dense<0.000000e+00> : vector<8x128xf32>
    %101 = tpu.matmul %100, %1, %cst_30 {dimension_numbers = #tpu.dot_dimension_numbers<[1], [0], [0], [1], [0, 0, 1, 1], [], []>} : vector<8x32xbf16>, vector<32x128xbf16>, vector<8x128xf32> -> vector<8x128xf32>
    %102 = arith.addf %99, %101 : vector<8x128xf32>
    %cst_31 = arith.constant 5.000000e-01 : f32
    %103 = vector.broadcast %cst_31 : f32 to vector<8x128xf32>
    %104 = arith.mulf %103, %102 : vector<8x128xf32>
    %105 = math.tanh %104 : vector<8x128xf32>
    %cst_32 = arith.constant 1.000000e+00 : f32
    %106 = vector.broadcast %cst_32 : f32 to vector<8x128xf32>
    %107 = arith.addf %105, %106 : vector<8x128xf32>
    %cst_33 = arith.constant 5.000000e-01 : f32
    %108 = vector.broadcast %cst_33 : f32 to vector<8x128xf32>
    %109 = arith.mulf %108, %107 : vector<8x128xf32>
    %110 = math.tanh %102 : vector<8x128xf32>
    %111 = vector.extract_strided_slice %109 {offsets = [0, 0], sizes = [8, 32], strides = [1, 1]} : vector<8x128xf32> to vector<8x32xf32>
    %112 = vector.extract_strided_slice %109 {offsets = [0, 32], sizes = [8, 32], strides = [1, 1]} : vector<8x128xf32> to vector<8x32xf32>
    %113 = vector.extract_strided_slice %110 {offsets = [0, 64], sizes = [8, 32], strides = [1, 1]} : vector<8x128xf32> to vector<8x32xf32>
    %114 = vector.extract_strided_slice %109 {offsets = [0, 96], sizes = [8, 32], strides = [1, 1]} : vector<8x128xf32> to vector<8x32xf32>
    %115 = arith.mulf %112, %73 : vector<8x32xf32>
    %116 = arith.mulf %111, %113 : vector<8x32xf32>
    %117 = arith.addf %115, %116 : vector<8x32xf32>
    %118 = math.tanh %117 : vector<8x32xf32>
    %119 = arith.mulf %114, %118 : vector<8x32xf32>
    %120 = arith.truncf %119 : vector<8x32xf32> to vector<8x32xbf16>
    %cst_34 = arith.constant dense<0.000000e+00> : vector<8x128xf32>
    %121 = tpu.matmul %120, %0, %cst_34 {dimension_numbers = #tpu.dot_dimension_numbers<[1], [0], [0], [1], [0, 0, 1, 1], [], []>} : vector<8x32xbf16>, vector<32x128xbf16>, vector<8x128xf32> -> vector<8x128xf32>
    %122 = arith.truncf %98 : vector<8x32xf32> to vector<8x32xbf16>
    %cst_35 = arith.constant dense<0.000000e+00> : vector<8x128xf32>
    %123 = tpu.matmul %122, %2, %cst_35 {dimension_numbers = #tpu.dot_dimension_numbers<[1], [0], [0], [1], [0, 0, 1, 1], [], []>} : vector<8x32xbf16>, vector<32x128xbf16>, vector<8x128xf32> -> vector<8x128xf32>
    %124 = arith.addf %121, %123 : vector<8x128xf32>
    %125 = arith.addf %124, %5 : vector<8x128xf32>
    %cst_36 = arith.constant 5.000000e-01 : f32
    %126 = vector.broadcast %cst_36 : f32 to vector<8x128xf32>
    %127 = arith.mulf %126, %125 : vector<8x128xf32>
    %128 = math.tanh %127 : vector<8x128xf32>
    %cst_37 = arith.constant 1.000000e+00 : f32
    %129 = vector.broadcast %cst_37 : f32 to vector<8x128xf32>
    %130 = arith.addf %128, %129 : vector<8x128xf32>
    %cst_38 = arith.constant 5.000000e-01 : f32
    %131 = vector.broadcast %cst_38 : f32 to vector<8x128xf32>
    %132 = arith.mulf %131, %130 : vector<8x128xf32>
    %133 = math.tanh %125 : vector<8x128xf32>
    %134 = vector.extract_strided_slice %132 {offsets = [0, 0], sizes = [8, 32], strides = [1, 1]} : vector<8x128xf32> to vector<8x32xf32>
    %135 = vector.extract_strided_slice %132 {offsets = [0, 32], sizes = [8, 32], strides = [1, 1]} : vector<8x128xf32> to vector<8x32xf32>
    %136 = vector.extract_strided_slice %133 {offsets = [0, 64], sizes = [8, 32], strides = [1, 1]} : vector<8x128xf32> to vector<8x32xf32>
    %137 = vector.extract_strided_slice %132 {offsets = [0, 96], sizes = [8, 32], strides = [1, 1]} : vector<8x128xf32> to vector<8x32xf32>
    %138 = arith.mulf %135, %96 : vector<8x32xf32>
    %139 = arith.mulf %134, %136 : vector<8x32xf32>
    %140 = arith.addf %138, %139 : vector<8x32xf32>
    %141 = math.tanh %140 : vector<8x32xf32>
    %142 = arith.mulf %137, %141 : vector<8x32xf32>
    %143 = vector.extract_strided_slice %6 {offsets = [24, 0], sizes = [8, 128], strides = [1, 1]} : vector<64x128xf32> to vector<8x128xf32>
    %144 = arith.truncf %119 : vector<8x32xf32> to vector<8x32xbf16>
    %cst_39 = arith.constant dense<0.000000e+00> : vector<8x128xf32>
    %145 = tpu.matmul %144, %1, %cst_39 {dimension_numbers = #tpu.dot_dimension_numbers<[1], [0], [0], [1], [0, 0, 1, 1], [], []>} : vector<8x32xbf16>, vector<32x128xbf16>, vector<8x128xf32> -> vector<8x128xf32>
    %146 = arith.addf %143, %145 : vector<8x128xf32>
    %cst_40 = arith.constant 5.000000e-01 : f32
    %147 = vector.broadcast %cst_40 : f32 to vector<8x128xf32>
    %148 = arith.mulf %147, %146 : vector<8x128xf32>
    %149 = math.tanh %148 : vector<8x128xf32>
    %cst_41 = arith.constant 1.000000e+00 : f32
    %150 = vector.broadcast %cst_41 : f32 to vector<8x128xf32>
    %151 = arith.addf %149, %150 : vector<8x128xf32>
    %cst_42 = arith.constant 5.000000e-01 : f32
    %152 = vector.broadcast %cst_42 : f32 to vector<8x128xf32>
    %153 = arith.mulf %152, %151 : vector<8x128xf32>
    %154 = math.tanh %146 : vector<8x128xf32>
    %155 = vector.extract_strided_slice %153 {offsets = [0, 0], sizes = [8, 32], strides = [1, 1]} : vector<8x128xf32> to vector<8x32xf32>
    %156 = vector.extract_strided_slice %153 {offsets = [0, 32], sizes = [8, 32], strides = [1, 1]} : vector<8x128xf32> to vector<8x32xf32>
    %157 = vector.extract_strided_slice %154 {offsets = [0, 64], sizes = [8, 32], strides = [1, 1]} : vector<8x128xf32> to vector<8x32xf32>
    %158 = vector.extract_strided_slice %153 {offsets = [0, 96], sizes = [8, 32], strides = [1, 1]} : vector<8x128xf32> to vector<8x32xf32>
    %159 = arith.mulf %156, %117 : vector<8x32xf32>
    %160 = arith.mulf %155, %157 : vector<8x32xf32>
    %161 = arith.addf %159, %160 : vector<8x32xf32>
    %162 = math.tanh %161 : vector<8x32xf32>
    %163 = arith.mulf %158, %162 : vector<8x32xf32>
    %164 = arith.truncf %163 : vector<8x32xf32> to vector<8x32xbf16>
    %cst_43 = arith.constant dense<0.000000e+00> : vector<8x128xf32>
    %165 = tpu.matmul %164, %0, %cst_43 {dimension_numbers = #tpu.dot_dimension_numbers<[1], [0], [0], [1], [0, 0, 1, 1], [], []>} : vector<8x32xbf16>, vector<32x128xbf16>, vector<8x128xf32> -> vector<8x128xf32>
    %166 = arith.truncf %142 : vector<8x32xf32> to vector<8x32xbf16>
    %cst_44 = arith.constant dense<0.000000e+00> : vector<8x128xf32>
    %167 = tpu.matmul %166, %2, %cst_44 {dimension_numbers = #tpu.dot_dimension_numbers<[1], [0], [0], [1], [0, 0, 1, 1], [], []>} : vector<8x32xbf16>, vector<32x128xbf16>, vector<8x128xf32> -> vector<8x128xf32>
    %168 = arith.addf %165, %167 : vector<8x128xf32>
    %169 = arith.addf %168, %5 : vector<8x128xf32>
    %cst_45 = arith.constant 5.000000e-01 : f32
    %170 = vector.broadcast %cst_45 : f32 to vector<8x128xf32>
    %171 = arith.mulf %170, %169 : vector<8x128xf32>
    %172 = math.tanh %171 : vector<8x128xf32>
    %cst_46 = arith.constant 1.000000e+00 : f32
    %173 = vector.broadcast %cst_46 : f32 to vector<8x128xf32>
    %174 = arith.addf %172, %173 : vector<8x128xf32>
    %cst_47 = arith.constant 5.000000e-01 : f32
    %175 = vector.broadcast %cst_47 : f32 to vector<8x128xf32>
    %176 = arith.mulf %175, %174 : vector<8x128xf32>
    %177 = math.tanh %169 : vector<8x128xf32>
    %178 = vector.extract_strided_slice %176 {offsets = [0, 0], sizes = [8, 32], strides = [1, 1]} : vector<8x128xf32> to vector<8x32xf32>
    %179 = vector.extract_strided_slice %176 {offsets = [0, 32], sizes = [8, 32], strides = [1, 1]} : vector<8x128xf32> to vector<8x32xf32>
    %180 = vector.extract_strided_slice %177 {offsets = [0, 64], sizes = [8, 32], strides = [1, 1]} : vector<8x128xf32> to vector<8x32xf32>
    %181 = vector.extract_strided_slice %176 {offsets = [0, 96], sizes = [8, 32], strides = [1, 1]} : vector<8x128xf32> to vector<8x32xf32>
    %182 = arith.mulf %179, %140 : vector<8x32xf32>
    %183 = arith.mulf %178, %180 : vector<8x32xf32>
    %184 = arith.addf %182, %183 : vector<8x32xf32>
    %185 = math.tanh %184 : vector<8x32xf32>
    %186 = arith.mulf %181, %185 : vector<8x32xf32>
    %187 = vector.extract_strided_slice %6 {offsets = [32, 0], sizes = [8, 128], strides = [1, 1]} : vector<64x128xf32> to vector<8x128xf32>
    %188 = arith.truncf %163 : vector<8x32xf32> to vector<8x32xbf16>
    %cst_48 = arith.constant dense<0.000000e+00> : vector<8x128xf32>
    %189 = tpu.matmul %188, %1, %cst_48 {dimension_numbers = #tpu.dot_dimension_numbers<[1], [0], [0], [1], [0, 0, 1, 1], [], []>} : vector<8x32xbf16>, vector<32x128xbf16>, vector<8x128xf32> -> vector<8x128xf32>
    %190 = arith.addf %187, %189 : vector<8x128xf32>
    %cst_49 = arith.constant 5.000000e-01 : f32
    %191 = vector.broadcast %cst_49 : f32 to vector<8x128xf32>
    %192 = arith.mulf %191, %190 : vector<8x128xf32>
    %193 = math.tanh %192 : vector<8x128xf32>
    %cst_50 = arith.constant 1.000000e+00 : f32
    %194 = vector.broadcast %cst_50 : f32 to vector<8x128xf32>
    %195 = arith.addf %193, %194 : vector<8x128xf32>
    %cst_51 = arith.constant 5.000000e-01 : f32
    %196 = vector.broadcast %cst_51 : f32 to vector<8x128xf32>
    %197 = arith.mulf %196, %195 : vector<8x128xf32>
    %198 = math.tanh %190 : vector<8x128xf32>
    %199 = vector.extract_strided_slice %197 {offsets = [0, 0], sizes = [8, 32], strides = [1, 1]} : vector<8x128xf32> to vector<8x32xf32>
    %200 = vector.extract_strided_slice %197 {offsets = [0, 32], sizes = [8, 32], strides = [1, 1]} : vector<8x128xf32> to vector<8x32xf32>
    %201 = vector.extract_strided_slice %198 {offsets = [0, 64], sizes = [8, 32], strides = [1, 1]} : vector<8x128xf32> to vector<8x32xf32>
    %202 = vector.extract_strided_slice %197 {offsets = [0, 96], sizes = [8, 32], strides = [1, 1]} : vector<8x128xf32> to vector<8x32xf32>
    %203 = arith.mulf %200, %161 : vector<8x32xf32>
    %204 = arith.mulf %199, %201 : vector<8x32xf32>
    %205 = arith.addf %203, %204 : vector<8x32xf32>
    %206 = math.tanh %205 : vector<8x32xf32>
    %207 = arith.mulf %202, %206 : vector<8x32xf32>
    %208 = arith.truncf %207 : vector<8x32xf32> to vector<8x32xbf16>
    %cst_52 = arith.constant dense<0.000000e+00> : vector<8x128xf32>
    %209 = tpu.matmul %208, %0, %cst_52 {dimension_numbers = #tpu.dot_dimension_numbers<[1], [0], [0], [1], [0, 0, 1, 1], [], []>} : vector<8x32xbf16>, vector<32x128xbf16>, vector<8x128xf32> -> vector<8x128xf32>
    %210 = arith.truncf %186 : vector<8x32xf32> to vector<8x32xbf16>
    %cst_53 = arith.constant dense<0.000000e+00> : vector<8x128xf32>
    %211 = tpu.matmul %210, %2, %cst_53 {dimension_numbers = #tpu.dot_dimension_numbers<[1], [0], [0], [1], [0, 0, 1, 1], [], []>} : vector<8x32xbf16>, vector<32x128xbf16>, vector<8x128xf32> -> vector<8x128xf32>
    %212 = arith.addf %209, %211 : vector<8x128xf32>
    %213 = arith.addf %212, %5 : vector<8x128xf32>
    %cst_54 = arith.constant 5.000000e-01 : f32
    %214 = vector.broadcast %cst_54 : f32 to vector<8x128xf32>
    %215 = arith.mulf %214, %213 : vector<8x128xf32>
    %216 = math.tanh %215 : vector<8x128xf32>
    %cst_55 = arith.constant 1.000000e+00 : f32
    %217 = vector.broadcast %cst_55 : f32 to vector<8x128xf32>
    %218 = arith.addf %216, %217 : vector<8x128xf32>
    %cst_56 = arith.constant 5.000000e-01 : f32
    %219 = vector.broadcast %cst_56 : f32 to vector<8x128xf32>
    %220 = arith.mulf %219, %218 : vector<8x128xf32>
    %221 = math.tanh %213 : vector<8x128xf32>
    %222 = vector.extract_strided_slice %220 {offsets = [0, 0], sizes = [8, 32], strides = [1, 1]} : vector<8x128xf32> to vector<8x32xf32>
    %223 = vector.extract_strided_slice %220 {offsets = [0, 32], sizes = [8, 32], strides = [1, 1]} : vector<8x128xf32> to vector<8x32xf32>
    %224 = vector.extract_strided_slice %221 {offsets = [0, 64], sizes = [8, 32], strides = [1, 1]} : vector<8x128xf32> to vector<8x32xf32>
    %225 = vector.extract_strided_slice %220 {offsets = [0, 96], sizes = [8, 32], strides = [1, 1]} : vector<8x128xf32> to vector<8x32xf32>
    %226 = arith.mulf %223, %184 : vector<8x32xf32>
    %227 = arith.mulf %222, %224 : vector<8x32xf32>
    %228 = arith.addf %226, %227 : vector<8x32xf32>
    %229 = math.tanh %228 : vector<8x32xf32>
    %230 = arith.mulf %225, %229 : vector<8x32xf32>
    %231 = vector.extract_strided_slice %6 {offsets = [40, 0], sizes = [8, 128], strides = [1, 1]} : vector<64x128xf32> to vector<8x128xf32>
    %232 = arith.truncf %207 : vector<8x32xf32> to vector<8x32xbf16>
    %cst_57 = arith.constant dense<0.000000e+00> : vector<8x128xf32>
    %233 = tpu.matmul %232, %1, %cst_57 {dimension_numbers = #tpu.dot_dimension_numbers<[1], [0], [0], [1], [0, 0, 1, 1], [], []>} : vector<8x32xbf16>, vector<32x128xbf16>, vector<8x128xf32> -> vector<8x128xf32>
    %234 = arith.addf %231, %233 : vector<8x128xf32>
    %cst_58 = arith.constant 5.000000e-01 : f32
    %235 = vector.broadcast %cst_58 : f32 to vector<8x128xf32>
    %236 = arith.mulf %235, %234 : vector<8x128xf32>
    %237 = math.tanh %236 : vector<8x128xf32>
    %cst_59 = arith.constant 1.000000e+00 : f32
    %238 = vector.broadcast %cst_59 : f32 to vector<8x128xf32>
    %239 = arith.addf %237, %238 : vector<8x128xf32>
    %cst_60 = arith.constant 5.000000e-01 : f32
    %240 = vector.broadcast %cst_60 : f32 to vector<8x128xf32>
    %241 = arith.mulf %240, %239 : vector<8x128xf32>
    %242 = math.tanh %234 : vector<8x128xf32>
    %243 = vector.extract_strided_slice %241 {offsets = [0, 0], sizes = [8, 32], strides = [1, 1]} : vector<8x128xf32> to vector<8x32xf32>
    %244 = vector.extract_strided_slice %241 {offsets = [0, 32], sizes = [8, 32], strides = [1, 1]} : vector<8x128xf32> to vector<8x32xf32>
    %245 = vector.extract_strided_slice %242 {offsets = [0, 64], sizes = [8, 32], strides = [1, 1]} : vector<8x128xf32> to vector<8x32xf32>
    %246 = vector.extract_strided_slice %241 {offsets = [0, 96], sizes = [8, 32], strides = [1, 1]} : vector<8x128xf32> to vector<8x32xf32>
    %247 = arith.mulf %244, %205 : vector<8x32xf32>
    %248 = arith.mulf %243, %245 : vector<8x32xf32>
    %249 = arith.addf %247, %248 : vector<8x32xf32>
    %250 = math.tanh %249 : vector<8x32xf32>
    %251 = arith.mulf %246, %250 : vector<8x32xf32>
    %252 = arith.truncf %251 : vector<8x32xf32> to vector<8x32xbf16>
    %cst_61 = arith.constant dense<0.000000e+00> : vector<8x128xf32>
    %253 = tpu.matmul %252, %0, %cst_61 {dimension_numbers = #tpu.dot_dimension_numbers<[1], [0], [0], [1], [0, 0, 1, 1], [], []>} : vector<8x32xbf16>, vector<32x128xbf16>, vector<8x128xf32> -> vector<8x128xf32>
    %254 = arith.truncf %230 : vector<8x32xf32> to vector<8x32xbf16>
    %cst_62 = arith.constant dense<0.000000e+00> : vector<8x128xf32>
    %255 = tpu.matmul %254, %2, %cst_62 {dimension_numbers = #tpu.dot_dimension_numbers<[1], [0], [0], [1], [0, 0, 1, 1], [], []>} : vector<8x32xbf16>, vector<32x128xbf16>, vector<8x128xf32> -> vector<8x128xf32>
    %256 = arith.addf %253, %255 : vector<8x128xf32>
    %257 = arith.addf %256, %5 : vector<8x128xf32>
    %cst_63 = arith.constant 5.000000e-01 : f32
    %258 = vector.broadcast %cst_63 : f32 to vector<8x128xf32>
    %259 = arith.mulf %258, %257 : vector<8x128xf32>
    %260 = math.tanh %259 : vector<8x128xf32>
    %cst_64 = arith.constant 1.000000e+00 : f32
    %261 = vector.broadcast %cst_64 : f32 to vector<8x128xf32>
    %262 = arith.addf %260, %261 : vector<8x128xf32>
    %cst_65 = arith.constant 5.000000e-01 : f32
    %263 = vector.broadcast %cst_65 : f32 to vector<8x128xf32>
    %264 = arith.mulf %263, %262 : vector<8x128xf32>
    %265 = math.tanh %257 : vector<8x128xf32>
    %266 = vector.extract_strided_slice %264 {offsets = [0, 0], sizes = [8, 32], strides = [1, 1]} : vector<8x128xf32> to vector<8x32xf32>
    %267 = vector.extract_strided_slice %264 {offsets = [0, 32], sizes = [8, 32], strides = [1, 1]} : vector<8x128xf32> to vector<8x32xf32>
    %268 = vector.extract_strided_slice %265 {offsets = [0, 64], sizes = [8, 32], strides = [1, 1]} : vector<8x128xf32> to vector<8x32xf32>
    %269 = vector.extract_strided_slice %264 {offsets = [0, 96], sizes = [8, 32], strides = [1, 1]} : vector<8x128xf32> to vector<8x32xf32>
    %270 = arith.mulf %267, %228 : vector<8x32xf32>
    %271 = arith.mulf %266, %268 : vector<8x32xf32>
    %272 = arith.addf %270, %271 : vector<8x32xf32>
    %273 = math.tanh %272 : vector<8x32xf32>
    %274 = arith.mulf %269, %273 : vector<8x32xf32>
    %275 = vector.extract_strided_slice %6 {offsets = [48, 0], sizes = [8, 128], strides = [1, 1]} : vector<64x128xf32> to vector<8x128xf32>
    %276 = arith.truncf %251 : vector<8x32xf32> to vector<8x32xbf16>
    %cst_66 = arith.constant dense<0.000000e+00> : vector<8x128xf32>
    %277 = tpu.matmul %276, %1, %cst_66 {dimension_numbers = #tpu.dot_dimension_numbers<[1], [0], [0], [1], [0, 0, 1, 1], [], []>} : vector<8x32xbf16>, vector<32x128xbf16>, vector<8x128xf32> -> vector<8x128xf32>
    %278 = arith.addf %275, %277 : vector<8x128xf32>
    %cst_67 = arith.constant 5.000000e-01 : f32
    %279 = vector.broadcast %cst_67 : f32 to vector<8x128xf32>
    %280 = arith.mulf %279, %278 : vector<8x128xf32>
    %281 = math.tanh %280 : vector<8x128xf32>
    %cst_68 = arith.constant 1.000000e+00 : f32
    %282 = vector.broadcast %cst_68 : f32 to vector<8x128xf32>
    %283 = arith.addf %281, %282 : vector<8x128xf32>
    %cst_69 = arith.constant 5.000000e-01 : f32
    %284 = vector.broadcast %cst_69 : f32 to vector<8x128xf32>
    %285 = arith.mulf %284, %283 : vector<8x128xf32>
    %286 = math.tanh %278 : vector<8x128xf32>
    %287 = vector.extract_strided_slice %285 {offsets = [0, 0], sizes = [8, 32], strides = [1, 1]} : vector<8x128xf32> to vector<8x32xf32>
    %288 = vector.extract_strided_slice %285 {offsets = [0, 32], sizes = [8, 32], strides = [1, 1]} : vector<8x128xf32> to vector<8x32xf32>
    %289 = vector.extract_strided_slice %286 {offsets = [0, 64], sizes = [8, 32], strides = [1, 1]} : vector<8x128xf32> to vector<8x32xf32>
    %290 = vector.extract_strided_slice %285 {offsets = [0, 96], sizes = [8, 32], strides = [1, 1]} : vector<8x128xf32> to vector<8x32xf32>
    %291 = arith.mulf %288, %249 : vector<8x32xf32>
    %292 = arith.mulf %287, %289 : vector<8x32xf32>
    %293 = arith.addf %291, %292 : vector<8x32xf32>
    %294 = math.tanh %293 : vector<8x32xf32>
    %295 = arith.mulf %290, %294 : vector<8x32xf32>
    %296 = arith.truncf %295 : vector<8x32xf32> to vector<8x32xbf16>
    %cst_70 = arith.constant dense<0.000000e+00> : vector<8x128xf32>
    %297 = tpu.matmul %296, %0, %cst_70 {dimension_numbers = #tpu.dot_dimension_numbers<[1], [0], [0], [1], [0, 0, 1, 1], [], []>} : vector<8x32xbf16>, vector<32x128xbf16>, vector<8x128xf32> -> vector<8x128xf32>
    %298 = arith.truncf %274 : vector<8x32xf32> to vector<8x32xbf16>
    %cst_71 = arith.constant dense<0.000000e+00> : vector<8x128xf32>
    %299 = tpu.matmul %298, %2, %cst_71 {dimension_numbers = #tpu.dot_dimension_numbers<[1], [0], [0], [1], [0, 0, 1, 1], [], []>} : vector<8x32xbf16>, vector<32x128xbf16>, vector<8x128xf32> -> vector<8x128xf32>
    %300 = arith.addf %297, %299 : vector<8x128xf32>
    %301 = arith.addf %300, %5 : vector<8x128xf32>
    %cst_72 = arith.constant 5.000000e-01 : f32
    %302 = vector.broadcast %cst_72 : f32 to vector<8x128xf32>
    %303 = arith.mulf %302, %301 : vector<8x128xf32>
    %304 = math.tanh %303 : vector<8x128xf32>
    %cst_73 = arith.constant 1.000000e+00 : f32
    %305 = vector.broadcast %cst_73 : f32 to vector<8x128xf32>
    %306 = arith.addf %304, %305 : vector<8x128xf32>
    %cst_74 = arith.constant 5.000000e-01 : f32
    %307 = vector.broadcast %cst_74 : f32 to vector<8x128xf32>
    %308 = arith.mulf %307, %306 : vector<8x128xf32>
    %309 = math.tanh %301 : vector<8x128xf32>
    %310 = vector.extract_strided_slice %308 {offsets = [0, 0], sizes = [8, 32], strides = [1, 1]} : vector<8x128xf32> to vector<8x32xf32>
    %311 = vector.extract_strided_slice %308 {offsets = [0, 32], sizes = [8, 32], strides = [1, 1]} : vector<8x128xf32> to vector<8x32xf32>
    %312 = vector.extract_strided_slice %309 {offsets = [0, 64], sizes = [8, 32], strides = [1, 1]} : vector<8x128xf32> to vector<8x32xf32>
    %313 = vector.extract_strided_slice %308 {offsets = [0, 96], sizes = [8, 32], strides = [1, 1]} : vector<8x128xf32> to vector<8x32xf32>
    %314 = arith.mulf %311, %272 : vector<8x32xf32>
    %315 = arith.mulf %310, %312 : vector<8x32xf32>
    %316 = arith.addf %314, %315 : vector<8x32xf32>
    %317 = math.tanh %316 : vector<8x32xf32>
    %318 = arith.mulf %313, %317 : vector<8x32xf32>
    %319 = vector.extract_strided_slice %6 {offsets = [56, 0], sizes = [8, 128], strides = [1, 1]} : vector<64x128xf32> to vector<8x128xf32>
    %320 = arith.truncf %295 : vector<8x32xf32> to vector<8x32xbf16>
    %cst_75 = arith.constant dense<0.000000e+00> : vector<8x128xf32>
    %321 = tpu.matmul %320, %1, %cst_75 {dimension_numbers = #tpu.dot_dimension_numbers<[1], [0], [0], [1], [0, 0, 1, 1], [], []>} : vector<8x32xbf16>, vector<32x128xbf16>, vector<8x128xf32> -> vector<8x128xf32>
    %322 = arith.addf %319, %321 : vector<8x128xf32>
    %cst_76 = arith.constant 5.000000e-01 : f32
    %323 = vector.broadcast %cst_76 : f32 to vector<8x128xf32>
    %324 = arith.mulf %323, %322 : vector<8x128xf32>
    %325 = math.tanh %324 : vector<8x128xf32>
    %cst_77 = arith.constant 1.000000e+00 : f32
    %326 = vector.broadcast %cst_77 : f32 to vector<8x128xf32>
    %327 = arith.addf %325, %326 : vector<8x128xf32>
    %cst_78 = arith.constant 5.000000e-01 : f32
    %328 = vector.broadcast %cst_78 : f32 to vector<8x128xf32>
    %329 = arith.mulf %328, %327 : vector<8x128xf32>
    %330 = math.tanh %322 : vector<8x128xf32>
    %331 = vector.extract_strided_slice %329 {offsets = [0, 0], sizes = [8, 32], strides = [1, 1]} : vector<8x128xf32> to vector<8x32xf32>
    %332 = vector.extract_strided_slice %329 {offsets = [0, 32], sizes = [8, 32], strides = [1, 1]} : vector<8x128xf32> to vector<8x32xf32>
    %333 = vector.extract_strided_slice %330 {offsets = [0, 64], sizes = [8, 32], strides = [1, 1]} : vector<8x128xf32> to vector<8x32xf32>
    %334 = vector.extract_strided_slice %329 {offsets = [0, 96], sizes = [8, 32], strides = [1, 1]} : vector<8x128xf32> to vector<8x32xf32>
    %335 = arith.mulf %332, %293 : vector<8x32xf32>
    %336 = arith.mulf %331, %333 : vector<8x32xf32>
    %337 = arith.addf %335, %336 : vector<8x32xf32>
    %338 = math.tanh %337 : vector<8x32xf32>
    %339 = arith.mulf %334, %338 : vector<8x32xf32>
    %340 = arith.truncf %339 : vector<8x32xf32> to vector<8x32xbf16>
    %cst_79 = arith.constant dense<0.000000e+00> : vector<8x128xf32>
    %341 = tpu.matmul %340, %0, %cst_79 {dimension_numbers = #tpu.dot_dimension_numbers<[1], [0], [0], [1], [0, 0, 1, 1], [], []>} : vector<8x32xbf16>, vector<32x128xbf16>, vector<8x128xf32> -> vector<8x128xf32>
    %342 = arith.truncf %318 : vector<8x32xf32> to vector<8x32xbf16>
    %cst_80 = arith.constant dense<0.000000e+00> : vector<8x128xf32>
    %343 = tpu.matmul %342, %2, %cst_80 {dimension_numbers = #tpu.dot_dimension_numbers<[1], [0], [0], [1], [0, 0, 1, 1], [], []>} : vector<8x32xbf16>, vector<32x128xbf16>, vector<8x128xf32> -> vector<8x128xf32>
    %344 = arith.addf %341, %343 : vector<8x128xf32>
    %345 = arith.addf %344, %5 : vector<8x128xf32>
    %cst_81 = arith.constant 5.000000e-01 : f32
    %346 = vector.broadcast %cst_81 : f32 to vector<8x128xf32>
    %347 = arith.mulf %346, %345 : vector<8x128xf32>
    %348 = math.tanh %347 : vector<8x128xf32>
    %cst_82 = arith.constant 1.000000e+00 : f32
    %349 = vector.broadcast %cst_82 : f32 to vector<8x128xf32>
    %350 = arith.addf %348, %349 : vector<8x128xf32>
    %cst_83 = arith.constant 5.000000e-01 : f32
    %351 = vector.broadcast %cst_83 : f32 to vector<8x128xf32>
    %352 = arith.mulf %351, %350 : vector<8x128xf32>
    %353 = math.tanh %345 : vector<8x128xf32>
    %354 = vector.extract_strided_slice %352 {offsets = [0, 0], sizes = [8, 32], strides = [1, 1]} : vector<8x128xf32> to vector<8x32xf32>
    %355 = vector.extract_strided_slice %352 {offsets = [0, 32], sizes = [8, 32], strides = [1, 1]} : vector<8x128xf32> to vector<8x32xf32>
    %356 = vector.extract_strided_slice %353 {offsets = [0, 64], sizes = [8, 32], strides = [1, 1]} : vector<8x128xf32> to vector<8x32xf32>
    %357 = vector.extract_strided_slice %352 {offsets = [0, 96], sizes = [8, 32], strides = [1, 1]} : vector<8x128xf32> to vector<8x32xf32>
    %358 = arith.mulf %355, %316 : vector<8x32xf32>
    %359 = arith.mulf %354, %356 : vector<8x32xf32>
    %360 = arith.addf %358, %359 : vector<8x32xf32>
    %361 = math.tanh %360 : vector<8x32xf32>
    %362 = arith.mulf %357, %361 : vector<8x32xf32>
    %363 = arith.truncf %362 : vector<8x32xf32> to vector<8x32xbf16>
    %c0_84 = arith.constant 0 : index
    %c0_85 = arith.constant 0 : index
    %364 = vector.load %arg5[%c0_84, %c0_85] : memref<32x128xbf16, #tpu.memory_space<vmem>>, vector<32x128xbf16>
    %cst_86 = arith.constant dense<0.000000e+00> : vector<8x128xf32>
    %365 = tpu.matmul %363, %364, %cst_86 {dimension_numbers = #tpu.dot_dimension_numbers<[1], [0], [0], [1], [0, 0, 1, 1], [], []>} : vector<8x32xbf16>, vector<32x128xbf16>, vector<8x128xf32> -> vector<8x128xf32>
    %c0_87 = arith.constant 0 : index
    %c0_88 = arith.constant 0 : index
    %366 = vector.load %arg6[%c0_87, %c0_88] : memref<1x128xf32, #tpu.memory_space<vmem>>, vector<1x128xf32>
    %367 = vector.broadcast %366 : vector<1x128xf32> to vector<8x128xf32>
    %368 = arith.addf %365, %367 : vector<8x128xf32>
    %c0_89 = arith.constant 0 : index
    %c0_90 = arith.constant 0 : index
    %369 = vector.load %arg7[%c0_89, %c0_90] : memref<8x128xf32, #tpu.memory_space<vmem>>, vector<8x128xf32>
    tpu.vector_store %arg7[%c0_89, %c0_90], %368 {strides = array<i32>} : memref<8x128xf32, #tpu.memory_space<vmem>>, vector<8x128xf32>,
    return
  }
}

</mosaic_0001>

<bundles_post_ra>
// kernel: lstm_classifier_forward.1
= control target key start
LH: loop header
LB: loop body
LE: loop exit
PB: predicated region body
PF: predicated region fallthrough
CT: control target
= control target key end

     0   :  { %v2022_v0 = vmov 0.0   ;;  %vm2023_vm0 = vmmov 0   ;;  %v2024_v3 = vmov 0   ;;  %s2025_s30 = smov 64   ;;  %s2026_s8 = smov 32   ;;  %vm66_vm1 = vcmask 261120   ;;  %s2439_s2 = inlined_call_operand.vmem [shape: bf16[32,128], index: 2, kind: input, shape index: {}]   ;;  %s2440_s0 = inlined_call_operand.vmem [shape: f32[64,128], index: 0, kind: input, shape index: {}]   ;;  %s2441_s3 = inlined_call_operand.vmem [shape: bf16[32,128], index: 3, kind: input, shape index: {}]   ;;  %s2442_s1 = inlined_call_operand.vmem [shape: bf16[32,128], index: 1, kind: input, shape index: {}]   ;;  %s2443_s4 = inlined_call_operand.vmem [shape: f32[1,128], index: 4, kind: input, shape index: {}]   ;;  %s2444_s5 = inlined_call_operand.vmem [shape: bf16[32,128], index: 5, kind: input, shape index: {}]   ;;  %s2445_s6 = inlined_call_operand.vmem [shape: f32[1,128], index: 6, kind: input, shape index: {}]   ;;  %s2446_s7 = inlined_call_operand.vmem [shape: f32[8,128], index: 7, kind: output, shape index: {}]  }
   0x1   :  { %1710 = vmatprep.subr.bf16.mxu0 %v2022_v0  ;;  %v2071_v1 = vld [vmem:[%s2439_s2 + $0x8] sm:$0xff]   ;;  %1714 = vmatprep.mubr.msk.bf16.mxu0 %vm2023_vm0, %v2022_v0  ;;  %v2082_v2 = vld [vmem:[%s2439_s2] sm:$0xff]  }
   0x2   :  { %1718 = vmatprep.subr.bf16.mxu1 %v2022_v0  ;;  %1722 = vmatprep.mubr.msk.bf16.mxu1 %vm2023_vm0, %v2022_v0  ;;  %v46_v4 = vld [vmem:[%s2440_s0] sm:$0xff]  ;;  %v2100_v20 = vld [vmem:[%s2441_s3 + $0x8] sm:$0xff]  }
   0x3   :  { %1711 = vmatpush3.bf16.msra.mxu0 %v2071_v1  ;;  %v2105_v21 = vld [vmem:[%s2441_s3] sm:$0xff]   ;;  %1719 = vmatpush3.bf16.msra.mxu1 %v2100_v20  ;;  %v2111_v22 = vld [vmem:[%s2442_s1 + $0x8] sm:$0xff]  }
   0x4   :  { %1712 = vmatprep.subr.bf16.mxu0 %v2022_v0  ;;  %1720 = vmatprep.subr.bf16.mxu1 %v2022_v0  ;;  %v2118_v23 = vld [vmem:[%s2442_s1] sm:$0xff]   ;;  %v47_v33 = vld [vmem:[%s2440_s0 + $0x8] sm:$0xff] }
   0x5   :  { %v2153_v34 = vld [vmem:[%s2443_s4] ss:$0 sm:$0xff] }
   0x7   :  { %1713 = vmatpush3.bf16.msra.mxu0 %v2082_v2  ;;  %1721 = vmatpush3.bf16.msra.mxu1 %v2105_v21 }
   0x8   :  { %1726 = vmatprep.subr.bf16.mxu0 %v2022_v0  ;;  %1734 = vmatprep.subr.bf16.mxu1 %v2022_v0 }
   0xa   :  { %1715 = vmatmul.mubr.bf16.vlgmr.msra.gmra.mxu0 %v2024_v3  ;;  %1723 = vmatmul.mubr.bf16.vlgmr.msra.gmra.mxu1 %v2024_v3 }
   0xb   :  { %1730 = vmatprep.mubr.msk.bf16.mxu0 %vm2023_vm0, %v2022_v0  ;;  %1727 = vmatpush3.bf16.msra.mxu0 %v2111_v22 }
   0xc   :  { %1728 = vmatprep.subr.bf16.mxu0 %v2022_v0  ;;  %1735 = vmatpush3.bf16.msra.mxu1 %v2071_v1 }
   0xd   :  { %1738 = vmatprep.mubr.msk.bf16.mxu1 %vm2023_vm0, %v2022_v0  ;;  %1736 = vmatprep.subr.bf16.mxu1 %v2022_v0 }
   0xf   :  { %1729 = vmatpush3.bf16.msra.mxu0 %v2118_v23 }
  0x10   :  { %1742 = vmatprep.subr.bf16.mxu0 %v2022_v0  ;;  %1737 = vmatpush3.bf16.msra.mxu1 %v2082_v2 }
  0x11   :  { %1750 = vmatprep.subr.bf16.mxu1 %v2022_v0 }
  0xca   :  { %v104_v5 = vpop.f32.mrf.mxu0  ;;  %v180_v28 = vpop.f32.mrf.mxu1 }
  0xcb   :  { %v110_v6 = vadd.f32 %v104_v5, %v46_v4 }
  0xcc   :  { %v1716_v7 = vpop.f32.mrf.mxu0  ;;  %v1724_v29 = vpop.f32.mrf.mxu1 }
  0xcd   :  { %1923 = vtanh.f32 %v110_v6  ;;  %v111_v11 = vmul.f32 0.5, %v110_v6  ;;  %v48_v29 = vld [vmem:[%s2440_s0 + $0x10] sm:$0xff] }
  0xce   :  { %v107_v8 = vpop.f32.mrf.mxu0  ;;  %v183_v30 = vpop.f32.mrf.mxu1 }
  0xcf   :  { %1925 = vtanh.f32 %v111_v11 }
  0xd0   :  { %v1717_v9 = vpop.f32.mrf.mxu0  ;;  %v1725_v31 = vpop.f32.mrf.mxu1 }
  0xda   :  { %v1924_v10 = vpop.eup %1923 }
  0xdb   :  { %118 = vrot.lane.b32.xlu0 %v1924_v10, %s2025_s30 }
  0xdc   :  { %v1926_v12 = vpop.eup %1925 }
  0xdd   :  { %v113_v13 = vadd.f32 1.0, %v1926_v12 }
  0xdf   :  { %v114_v14 = vmul.f32 0.5, %v113_v13 }
  0xe1   :  { %v116_v17 = vmul.f32 0.0, %v114_v14 }
 0x14d   :  { %v119_v15 = vpop.permute.xlu0 %118 }
 0x14e   :  { %v121_v16 = vmul.f32 %v119_v15, %v114_v14 }
 0x150   :  { %123 = vrot.lane.b32.xlu0 %v121_v16, %s2026_s8 }
 0x1c2   :  { %v124_v18 = vpop.permute.xlu0 %123 }
 0x1c3   :  { %v2094_v19 = vadd.f32 %v124_v18, %v116_v17 }
 0x1c5   :  { %1927 = vtanh.f32 %v2094_v19 }
 0x1d2   :  { %v1928_v24 = vpop.eup %1927 }
 0x1d3   :  { %129 = vrot.lane.b32.xlu1 %v1928_v24, %s2025_s30 }
 0x245   :  { %v130_v25 = vpop.permute.xlu1 %129 }
 0x246   :  { %v132_v26 = vmul.f32 %v130_v25, %v114_v14 }
 0x248   :  { %v133_v27 = vpack.c.bf16 %v132_v26, %v132_v26 }
 0x24a   :  { %187 = vrot.lane.b32.xlu1 %v133_v27, %s2026_s8 }
 0x2bc   :  { %v188_v32 = vpop.permute.xlu1 %187 }
 0x2bd   :  { %1731 = vmatmul.mubr.msk.bf16.vlgmr.msra.gmra.mxu0 %vm66_vm1, %v188_v32  ;;  %1739 = vmatmul.mubr.msk.bf16.vlgmr.msra.gmra.mxu1 %vm66_vm1, %v188_v32 }
 0x2be   :  { %1751 = vmatpush3.bf16.msra.mxu1 %v2111_v22  ;;  %1743 = vmatpush3.bf16.msra.mxu0 %v2100_v20 }
 0x2bf   :  { %1752 = vmatprep.subr.bf16.mxu1 %v2022_v0  ;;  %1744 = vmatprep.subr.bf16.mxu0 %v2022_v0 }
 0x2c0   :  { %1754 = vmatprep.mubr.msk.bf16.mxu1 %vm2023_vm0, %v2022_v0  ;;  %1746 = vmatprep.mubr.msk.bf16.mxu0 %vm2023_vm0, %v2022_v0 }
 0x2c2   :  { %1753 = vmatpush3.bf16.msra.mxu1 %v2118_v23  ;;  %1745 = vmatpush3.bf16.msra.mxu0 %v2105_v21 }
 0x2c3   :  { %1758 = vmatprep.subr.bf16.mxu0 %v2022_v0  ;;  %1766 = vmatprep.subr.bf16.mxu1 %v2022_v0 }
 0x37d   :  { %v238_v35 = vpop.f32.mrf.mxu0  ;;  %v301_v36 = vpop.f32.mrf.mxu1 }
 0x37e   :  { %v239_v37 = vadd.f32 %v238_v35, %v180_v28  ;;  %v307_v38 = vadd.f32 %v301_v36, %v47_v33 }
 0x37f   :  { %v1732_v39 = vpop.f32.mrf.mxu0  ;;  %v1740_v40 = vpop.f32.mrf.mxu1 }
 0x380   :  { %v244_v41 = vadd.f32 %v2153_v34, %v239_v37  ;;  %1929 = vtanh.f32 %v307_v38  ;;  %v308_v48 = vmul.f32 0.5, %v307_v38 }
 0x381   :  { %v241_v42 = vpop.f32.mrf.mxu0  ;;  %v304_v43 = vpop.f32.mrf.mxu1 }
 0x382   :  { %1931 = vtanh.f32 %v244_v41  ;;  %v245_v49 = vmul.f32 0.5, %v244_v41 }
 0x383   :  { %v1733_v44 = vpop.f32.mrf.mxu0  ;;  %v1741_v45 = vpop.f32.mrf.mxu1  ;;  %1933 = vtanh.f32 %v308_v48 }
 0x384   :  { %1935 = vtanh.f32 %v245_v49 }
 0x38d   :  { %v1930_v46 = vpop.eup %1929 }
 0x38e   :  { %315 = vrot.lane.b32.xlu1 %v1930_v46, %s2025_s30 }
 0x38f   :  { %v1932_v47 = vpop.eup %1931 }
 0x390   :  { %252 = vrot.lane.b32.xlu0 %v1932_v47, %s2025_s30  ;;  %v1934_v50 = vpop.eup %1933 }
 0x391   :  { %v1936_v51 = vpop.eup %1935  ;;  %v310_v52 = vadd.f32 1.0, %v1934_v50 }
 0x392   :  { %v247_v53 = vadd.f32 1.0, %v1936_v51 }
 0x393   :  { %v311_v54 = vmul.f32 0.5, %v310_v52 }
 0x394   :  { %v248_v57 = vmul.f32 0.5, %v247_v53 }
 0x395   :  { %v313_v60 = vmul.f32 %v311_v54, %v2094_v19 }
 0x396   :  { %v250_v63 = vmul.f32 0.0, %v248_v57 }
 0x400   :  { %v316_v55 = vpop.permute.xlu1 %315 }
 0x401   :  { %v318_v56 = vmul.f32 %v316_v55, %v311_v54 }
 0x402   :  { %v253_v58 = vpop.permute.xlu0 %252 }
 0x403   :  { %v255_v59 = vmul.f32 %v253_v58, %v248_v57  ;;  %320 = vrot.lane.b32.xlu1 %v318_v56, %s2026_s8 }
 0x405   :  { %257 = vrot.lane.b32.xlu0 %v255_v59, %s2026_s8 }
 0x475   :  { %v321_v61 = vpop.permute.xlu1 %320 }
 0x476   :  { %v2161_v62 = vadd.f32 %v321_v61, %v313_v60 }
 0x477   :  { %v258_v3 = vpop.permute.xlu0 %257 }
 0x478   :  { %1937 = vtanh.f32 %v2161_v62  ;;  %v2164_v4 = vadd.f32 %v258_v3, %v250_v63 }
 0x47a   :  { %1939 = vtanh.f32 %v2164_v4 }
 0x485   :  { %v1938_v5 = vpop.eup %1937 }
 0x486   :  { %326 = vrot.lane.b32.xlu1 %v1938_v5, %s2025_s30 }
 0x487   :  { %v1940_v6 = vpop.eup %1939 }
 0x488   :  { %263 = vrot.lane.b32.xlu0 %v1940_v6, %s2025_s30 }
 0x4f8   :  { %v327_v7 = vpop.permute.xlu1 %326 }
 0x4f9   :  { %v329_v8 = vmul.f32 %v327_v7, %v311_v54 }
 0x4fa   :  { %v264_v9 = vpop.permute.xlu0 %263 }
 0x4fb   :  { %v330_v10 = vpack.c.bf16 %v329_v8, %v329_v8  ;;  %v266_v11 = vmul.f32 %v264_v9, %v248_v57 }
 0x4fd   :  { %v331_v12 = vpack.c.bf16 %v266_v11, %v266_v11  ;;  %379 = vrot.lane.b32.xlu1 %v330_v10, %s2026_s8  ;;  %v49_v10 = vld [vmem:[%s2440_s0 + $0x18] sm:$0xff] }
 0x4ff   :  { %333 = vrot.lane.b32.xlu0 %v331_v12, %s2026_s8 }
 0x56f   :  { %v380_v13 = vpop.permute.xlu1 %379 }
 0x570   :  { %1755 = vmatmul.mubr.msk.bf16.vlgmr.msra.gmra.mxu1 %vm66_vm1, %v380_v13 }
 0x571   :  { %v334_v14 = vpop.permute.xlu0 %333  ;;  %1767 = vmatpush3.bf16.msra.mxu1 %v2100_v20  ;;  %1770 = vmatprep.mubr.msk.bf16.mxu1 %vm2023_vm0, %v2022_v0 }
 0x572   :  { %1747 = vmatmul.mubr.msk.bf16.vlgmr.msra.gmra.mxu0 %vm66_vm1, %v334_v14  ;;  %1768 = vmatprep.subr.bf16.mxu1 %v2022_v0 }
 0x573   :  { %1759 = vmatpush3.bf16.msra.mxu0 %v2071_v1  ;;  %1762 = vmatprep.mubr.msk.bf16.mxu0 %vm2023_vm0, %v2022_v0 }
 0x574   :  { %1760 = vmatprep.subr.bf16.mxu0 %v2022_v0 }
 0x575   :  { %1769 = vmatpush3.bf16.msra.mxu1 %v2105_v21 }
 0x576   :  { %1782 = vmatprep.subr.bf16.mxu1 %v2022_v0 }
 0x577   :  { %1761 = vmatpush3.bf16.msra.mxu0 %v2082_v2 }
 0x578   :  { %1774 = vmatprep.subr.bf16.mxu0 %v2022_v0 }
 0x57a   :  { %1763 = vmatmul.mubr.msk.bf16.vlgmr.msra.gmra.mxu0 %vm66_vm1, %v380_v13 }
 0x57b   :  { %1775 = vmatpush3.bf16.msra.mxu0 %v2111_v22  ;;  %1778 = vmatprep.mubr.msk.bf16.mxu0 %vm2023_vm0, %v2022_v0 }
 0x57c   :  { %1776 = vmatprep.subr.bf16.mxu0 %v2022_v0 }
 0x57f   :  { %1777 = vmatpush3.bf16.msra.mxu0 %v2118_v23 }
 0x580   :  { %1790 = vmatprep.subr.bf16.mxu0 %v2022_v0 }
 0x630   :  { %v418_v15 = vpop.f32.mrf.mxu1 }
 0x632   :  { %v372_v16 = vpop.f32.mrf.mxu0  ;;  %v1756_v17 = vpop.f32.mrf.mxu1 }
 0x633   :  { %v419_v18 = vadd.f32 %v418_v15, %v372_v16 }
 0x634   :  { %v1748_v19 = vpop.f32.mrf.mxu0  ;;  %v421_v24 = vpop.f32.mrf.mxu1 }
 0x635   :  { %v424_v25 = vadd.f32 %v2153_v34, %v419_v18 }
 0x636   :  { %v375_v26 = vpop.f32.mrf.mxu0  ;;  %v1757_v27 = vpop.f32.mrf.mxu1 }
 0x637   :  { %1941 = vtanh.f32 %v424_v25  ;;  %v425_v38 = vmul.f32 0.5, %v424_v25 }
 0x638   :  { %v1749_v28 = vpop.f32.mrf.mxu0 }
 0x63a   :  { %v481_v30 = vpop.f32.mrf.mxu0 }
 0x63b   :  { %v487_v31 = vadd.f32 %v481_v30, %v48_v29 }
 0x63c   :  { %v1764_v32 = vpop.f32.mrf.mxu0 }
 0x63d   :  { %1943 = vtanh.f32 %v487_v31  ;;  %v488_v39 = vmul.f32 0.5, %v487_v31 }
 0x63e   :  { %v484_v33 = vpop.f32.mrf.mxu0  ;;  %1945 = vtanh.f32 %v425_v38 }
 0x63f   :  { %1947 = vtanh.f32 %v488_v39 }
 0x640   :  { %v1765_v35 = vpop.f32.mrf.mxu0 }
 0x644   :  { %v1942_v36 = vpop.eup %1941 }
 0x645   :  { %432 = vrot.lane.b32.xlu0 %v1942_v36, %s2025_s30 }
 0x64a   :  { %v1944_v37 = vpop.eup %1943 }
 0x64b   :  { %495 = vrot.lane.b32.xlu1 %v1944_v37, %s2025_s30  ;;  %v1946_v40 = vpop.eup %1945 }
 0x64c   :  { %v427_v41 = vadd.f32 1.0, %v1946_v40  ;;  %v1948_v42 = vpop.eup %1947 }
 0x64d   :  { %v490_v46 = vadd.f32 1.0, %v1948_v42 }
 0x64e   :  { %v428_v43 = vmul.f32 0.5, %v427_v41 }
 0x64f   :  { %v491_v47 = vmul.f32 0.5, %v490_v46 }
 0x650   :  { %v430_v50 = vmul.f32 %v428_v43, %v2164_v4 }
 0x651   :  { %v493_v53 = vmul.f32 %v491_v47, %v2161_v62 }
 0x6b7   :  { %v433_v44 = vpop.permute.xlu0 %432 }
 0x6b8   :  { %v435_v45 = vmul.f32 %v433_v44, %v428_v43 }
 0x6ba   :  { %437 = vrot.lane.b32.xlu0 %v435_v45, %s2026_s8 }
 0x6bd   :  { %v496_v48 = vpop.permute.xlu1 %495 }
 0x6be   :  { %v498_v49 = vmul.f32 %v496_v48, %v491_v47 }
 0x6c0   :  { %500 = vrot.lane.b32.xlu1 %v498_v49, %s2026_s8 }
 0x72c   :  { %v438_v51 = vpop.permute.xlu0 %437 }
 0x72d   :  { %v2201_v52 = vadd.f32 %v438_v51, %v430_v50 }
 0x72f   :  { %1949 = vtanh.f32 %v2201_v52 }
 0x732   :  { %v501_v54 = vpop.permute.xlu1 %500 }
 0x733   :  { %v2205_v55 = vadd.f32 %v501_v54, %v493_v53 }
 0x735   :  { %1951 = vtanh.f32 %v2205_v55 }
 0x73c   :  { %v1950_v56 = vpop.eup %1949 }
 0x73d   :  { %443 = vrot.lane.b32.xlu0 %v1950_v56, %s2025_s30 }
 0x742   :  { %v1952_v57 = vpop.eup %1951 }
 0x743   :  { %506 = vrot.lane.b32.xlu1 %v1952_v57, %s2025_s30 }
 0x7af   :  { %v444_v58 = vpop.permute.xlu0 %443 }
 0x7b0   :  { %v446_v59 = vmul.f32 %v444_v58, %v428_v43 }
 0x7b2   :  { %v511_v60 = vpack.c.bf16 %v446_v59, %v446_v59 }
 0x7b4   :  { %513 = vrot.lane.b32.xlu0 %v511_v60, %s2026_s8 }
 0x7b5   :  { %v507_v61 = vpop.permute.xlu1 %506 }
 0x7b6   :  { %v509_v63 = vmul.f32 %v507_v61, %v491_v47 }
 0x7b8   :  { %v510_v3 = vpack.c.bf16 %v509_v63, %v509_v63 }
 0x7ba   :  { %559 = vrot.lane.b32.xlu1 %v510_v3, %s2026_s8 }
 0x826   :  { %v514_v62 = vpop.permute.xlu0 %513 }
 0x827   :  { %1771 = vmatmul.mubr.msk.bf16.vlgmr.msra.gmra.mxu1 %vm66_vm1, %v514_v62 }
 0x828   :  { %1783 = vmatpush3.bf16.msra.mxu1 %v2071_v1  ;;  %1786 = vmatprep.mubr.msk.bf16.mxu1 %vm2023_vm0, %v2022_v0 }
 0x829   :  { %1784 = vmatprep.subr.bf16.mxu1 %v2022_v0 }
 0x82c   :  { %1785 = vmatpush3.bf16.msra.mxu1 %v2082_v2  ;;  %v560_v4 = vpop.permute.xlu1 %559 }
 0x82d   :  { %1779 = vmatmul.mubr.msk.bf16.vlgmr.msra.gmra.mxu0 %vm66_vm1, %v560_v4  ;;  %1798 = vmatprep.subr.bf16.mxu1 %v2022_v0 }
 0x82e   :  { %1791 = vmatpush3.bf16.msra.mxu0 %v2100_v20  ;;  %1794 = vmatprep.mubr.msk.bf16.mxu0 %vm2023_vm0, %v2022_v0 }
 0x82f   :  { %1787 = vmatmul.mubr.msk.bf16.vlgmr.msra.gmra.mxu1 %vm66_vm1, %v560_v4  ;;  %1792 = vmatprep.subr.bf16.mxu0 %v2022_v0  ;;  %v50_v4 = vld [vmem:[%s2440_s0 + $0x20] sm:$0xff] }
 0x830   :  { %1799 = vmatpush3.bf16.msra.mxu1 %v2111_v22  ;;  %1802 = vmatprep.mubr.msk.bf16.mxu1 %vm2023_vm0, %v2022_v0 }
 0x831   :  { %1800 = vmatprep.subr.bf16.mxu1 %v2022_v0 }
 0x832   :  { %1793 = vmatpush3.bf16.msra.mxu0 %v2105_v21 }
 0x833   :  { %1806 = vmatprep.subr.bf16.mxu0 %v2022_v0 }
 0x834   :  { %1801 = vmatpush3.bf16.msra.mxu1 %v2118_v23 }
 0x835   :  { %1814 = vmatprep.subr.bf16.mxu1 %v2022_v0 }
 0x8e7   :  { %v552_v5 = vpop.f32.mrf.mxu1 }
 0x8e9   :  { %v1772_v6 = vpop.f32.mrf.mxu1 }
 0x8eb   :  { %v555_v7 = vpop.f32.mrf.mxu1 }
 0x8ed   :  { %v1773_v8 = vpop.f32.mrf.mxu1  ;;  %v598_v9 = vpop.f32.mrf.mxu0 }
 0x8ee   :  { %v599_v11 = vadd.f32 %v598_v9, %v552_v5 }
 0x8ef   :  { %v1780_v12 = vpop.f32.mrf.mxu0  ;;  %v661_v13 = vpop.f32.mrf.mxu1 }
 0x8f0   :  { %v604_v14 = vadd.f32 %v2153_v34, %v599_v11  ;;  %v667_v15 = vadd.f32 %v661_v13, %v49_v10 }
 0x8f1   :  { %v601_v16 = vpop.f32.mrf.mxu0  ;;  %v1788_v17 = vpop.f32.mrf.mxu1 }
 0x8f2   :  { %1953 = vtanh.f32 %v604_v14  ;;  %v605_v27 = vmul.f32 0.5, %v604_v14  ;;  %v668_v28 = vmul.f32 0.5, %v667_v15 }
 0x8f3   :  { %1955 = vtanh.f32 %v667_v15  ;;  %v1781_v18 = vpop.f32.mrf.mxu0  ;;  %v664_v19 = vpop.f32.mrf.mxu1 }
 0x8f4   :  { %1957 = vtanh.f32 %v605_v27 }
 0x8f5   :  { %v1789_v24 = vpop.f32.mrf.mxu1  ;;  %1959 = vtanh.f32 %v668_v28 }
 0x8ff   :  { %v1954_v25 = vpop.eup %1953 }
 0x900   :  { %v1956_v26 = vpop.eup %1955  ;;  %612 = vrot.lane.b32.xlu0 %v1954_v25, %s2025_s30 }
 0x901   :  { %675 = vrot.lane.b32.xlu1 %v1956_v26, %s2025_s30  ;;  %v1958_v29 = vpop.eup %1957 }
 0x902   :  { %v1960_v30 = vpop.eup %1959  ;;  %v607_v31 = vadd.f32 1.0, %v1958_v29 }
 0x903   :  { %v670_v32 = vadd.f32 1.0, %v1960_v30 }
 0x904   :  { %v608_v33 = vmul.f32 0.5, %v607_v31 }
 0x905   :  { %v671_v35 = vmul.f32 0.5, %v670_v32 }
 0x906   :  { %v610_v40 = vmul.f32 %v608_v33, %v2201_v52 }
 0x907   :  { %v673_v41 = vmul.f32 %v671_v35, %v2205_v55 }
 0x972   :  { %v613_v36 = vpop.permute.xlu0 %612 }
 0x973   :  { %v676_v37 = vpop.permute.xlu1 %675  ;;  %v615_v38 = vmul.f32 %v613_v36, %v608_v33 }
 0x974   :  { %v678_v39 = vmul.f32 %v676_v37, %v671_v35 }
 0x975   :  { %617 = vrot.lane.b32.xlu0 %v615_v38, %s2026_s8 }
 0x976   :  { %680 = vrot.lane.b32.xlu1 %v678_v39, %s2026_s8 }
 0x9e7   :  { %v618_v42 = vpop.permute.xlu0 %617 }
 0x9e8   :  { %v681_v43 = vpop.permute.xlu1 %680  ;;  %v2243_v44 = vadd.f32 %v618_v42, %v610_v40 }
 0x9e9   :  { %v2245_v45 = vadd.f32 %v681_v43, %v673_v41 }
 0x9ea   :  { %1961 = vtanh.f32 %v2243_v44 }
 0x9eb   :  { %1963 = vtanh.f32 %v2245_v45 }
 0x9f7   :  { %v1962_v46 = vpop.eup %1961 }
 0x9f8   :  { %v1964_v47 = vpop.eup %1963  ;;  %623 = vrot.lane.b32.xlu0 %v1962_v46, %s2025_s30 }
 0x9f9   :  { %686 = vrot.lane.b32.xlu1 %v1964_v47, %s2025_s30 }
 0xa6a   :  { %v624_v48 = vpop.permute.xlu0 %623 }
 0xa6b   :  { %v687_v49 = vpop.permute.xlu1 %686  ;;  %v626_v50 = vmul.f32 %v624_v48, %v608_v33 }
 0xa6c   :  { %v689_v51 = vmul.f32 %v687_v49, %v671_v35 }
 0xa6d   :  { %v691_v52 = vpack.c.bf16 %v626_v50, %v626_v50 }
 0xa6e   :  { %v690_v53 = vpack.c.bf16 %v689_v51, %v689_v51 }
 0xa6f   :  { %693 = vrot.lane.b32.xlu0 %v691_v52, %s2026_s8  ;;  %v51_v52 = vld [vmem:[%s2440_s0 + $0x28] sm:$0xff] }
 0xa70   :  { %739 = vrot.lane.b32.xlu1 %v690_v53, %s2026_s8 }
 0xae1   :  { %v694_v54 = vpop.permute.xlu0 %693 }
 0xae2   :  { %v740_v55 = vpop.permute.xlu1 %739  ;;  %1795 = vmatmul.mubr.msk.bf16.vlgmr.msra.gmra.mxu0 %vm66_vm1, %v694_v54 }
 0xae3   :  { %1803 = vmatmul.mubr.msk.bf16.vlgmr.msra.gmra.mxu1 %vm66_vm1, %v740_v55  ;;  %1807 = vmatpush3.bf16.msra.mxu0 %v2071_v1 }
 0xae4   :  { %1808 = vmatprep.subr.bf16.mxu0 %v2022_v0  ;;  %1810 = vmatprep.mubr.msk.bf16.mxu0 %vm2023_vm0, %v2022_v0 }
 0xae5   :  { %1815 = vmatpush3.bf16.msra.mxu1 %v2100_v20  ;;  %1818 = vmatprep.mubr.msk.bf16.mxu1 %vm2023_vm0, %v2022_v0 }
 0xae6   :  { %1816 = vmatprep.subr.bf16.mxu1 %v2022_v0 }
 0xae7   :  { %1809 = vmatpush3.bf16.msra.mxu0 %v2082_v2 }
 0xae8   :  { %1822 = vmatprep.subr.bf16.mxu0 %v2022_v0 }
 0xae9   :  { %1817 = vmatpush3.bf16.msra.mxu1 %v2105_v21 }
 0xaea   :  { %1811 = vmatmul.mubr.msk.bf16.vlgmr.msra.gmra.mxu0 %vm66_vm1, %v740_v55  ;;  %1830 = vmatprep.subr.bf16.mxu1 %v2022_v0 }
 0xaeb   :  { %1823 = vmatpush3.bf16.msra.mxu0 %v2111_v22  ;;  %1826 = vmatprep.mubr.msk.bf16.mxu0 %vm2023_vm0, %v2022_v0 }
 0xaec   :  { %1824 = vmatprep.subr.bf16.mxu0 %v2022_v0 }
 0xaef   :  { %1825 = vmatpush3.bf16.msra.mxu0 %v2118_v23 }
 0xaf0   :  { %1838 = vmatprep.subr.bf16.mxu0 %v2022_v0 }
 0xba2   :  { %v732_v56 = vpop.f32.mrf.mxu0 }
 0xba3   :  { %v778_v57 = vpop.f32.mrf.mxu1 }
 0xba4   :  { %v779_v58 = vadd.f32 %v778_v57, %v732_v56  ;;  %v1796_v59 = vpop.f32.mrf.mxu0 }
 0xba5   :  { %v1804_v60 = vpop.f32.mrf.mxu1 }
 0xba6   :  { %v784_v61 = vadd.f32 %v2153_v34, %v779_v58  ;;  %v735_v63 = vpop.f32.mrf.mxu0 }
 0xba7   :  { %v781_v3 = vpop.f32.mrf.mxu1 }
 0xba8   :  { %1965 = vtanh.f32 %v784_v61  ;;  %v1797_v62 = vpop.f32.mrf.mxu0  ;;  %v785_v13 = vmul.f32 0.5, %v784_v61 }
 0xba9   :  { %v1805_v5 = vpop.f32.mrf.mxu1 }
 0xbaa   :  { %v841_v6 = vpop.f32.mrf.mxu0 }
 0xbab   :  { %v847_v7 = vadd.f32 %v841_v6, %v50_v4 }
 0xbac   :  { %v1812_v8 = vpop.f32.mrf.mxu0 }
 0xbad   :  { %1967 = vtanh.f32 %v847_v7  ;;  %v848_v14 = vmul.f32 0.5, %v847_v7 }
 0xbae   :  { %v844_v9 = vpop.f32.mrf.mxu0  ;;  %1969 = vtanh.f32 %v785_v13 }
 0xbaf   :  { %1971 = vtanh.f32 %v848_v14 }
 0xbb0   :  { %v1813_v10 = vpop.f32.mrf.mxu0 }
 0xbb5   :  { %v1966_v11 = vpop.eup %1965 }
 0xbb6   :  { %792 = vrot.lane.b32.xlu0 %v1966_v11, %s2025_s30 }
 0xbba   :  { %v1968_v12 = vpop.eup %1967 }
 0xbbb   :  { %855 = vrot.lane.b32.xlu1 %v1968_v12, %s2025_s30  ;;  %v1970_v15 = vpop.eup %1969 }
 0xbbc   :  { %v787_v16 = vadd.f32 1.0, %v1970_v15  ;;  %v1972_v17 = vpop.eup %1971 }
 0xbbd   :  { %v850_v24 = vadd.f32 1.0, %v1972_v17 }
 0xbbe   :  { %v788_v18 = vmul.f32 0.5, %v787_v16 }
 0xbbf   :  { %v851_v26 = vmul.f32 0.5, %v850_v24 }
 0xbc0   :  { %v790_v29 = vmul.f32 %v788_v18, %v2243_v44 }
 0xbc1   :  { %v853_v32 = vmul.f32 %v851_v26, %v2245_v45 }
 0xc28   :  { %v793_v19 = vpop.permute.xlu0 %792 }
 0xc29   :  { %v795_v25 = vmul.f32 %v793_v19, %v788_v18 }
 0xc2b   :  { %797 = vrot.lane.b32.xlu0 %v795_v25, %s2026_s8 }
 0xc2d   :  { %v856_v27 = vpop.permute.xlu1 %855 }
 0xc2e   :  { %v858_v28 = vmul.f32 %v856_v27, %v851_v26 }
 0xc30   :  { %860 = vrot.lane.b32.xlu1 %v858_v28, %s2026_s8 }
 0xc9d   :  { %v798_v30 = vpop.permute.xlu0 %797 }
 0xc9e   :  { %v2283_v31 = vadd.f32 %v798_v30, %v790_v29 }
 0xca0   :  { %1973 = vtanh.f32 %v2283_v31 }
 0xca2   :  { %v861_v33 = vpop.permute.xlu1 %860 }
 0xca3   :  { %v2287_v35 = vadd.f32 %v861_v33, %v853_v32 }
 0xca5   :  { %1975 = vtanh.f32 %v2287_v35 }
 0xcad   :  { %v1974_v36 = vpop.eup %1973 }
 0xcae   :  { %803 = vrot.lane.b32.xlu0 %v1974_v36, %s2025_s30 }
 0xcb2   :  { %v1976_v37 = vpop.eup %1975 }
 0xcb3   :  { %866 = vrot.lane.b32.xlu1 %v1976_v37, %s2025_s30 }
 0xd20   :  { %v804_v38 = vpop.permute.xlu0 %803 }
 0xd21   :  { %v806_v39 = vmul.f32 %v804_v38, %v788_v18 }
 0xd23   :  { %v871_v40 = vpack.c.bf16 %v806_v39, %v806_v39 }
 0xd25   :  { %873 = vrot.lane.b32.xlu0 %v871_v40, %s2026_s8  ;;  %v867_v41 = vpop.permute.xlu1 %866 }
 0xd26   :  { %v869_v42 = vmul.f32 %v867_v41, %v851_v26 }
 0xd28   :  { %v870_v43 = vpack.c.bf16 %v869_v42, %v869_v42 }
 0xd2a   :  { %919 = vrot.lane.b32.xlu1 %v870_v43, %s2026_s8  ;;  %v52_v43 = vld [vmem:[%s2440_s0 + $0x30] sm:$0xff] }
 0xd97   :  { %v874_v44 = vpop.permute.xlu0 %873 }
 0xd98   :  { %1819 = vmatmul.mubr.msk.bf16.vlgmr.msra.gmra.mxu1 %vm66_vm1, %v874_v44 }
 0xd99   :  { %1831 = vmatpush3.bf16.msra.mxu1 %v2071_v1  ;;  %1834 = vmatprep.mubr.msk.bf16.mxu1 %vm2023_vm0, %v2022_v0 }
 0xd9a   :  { %1832 = vmatprep.subr.bf16.mxu1 %v2022_v0 }
 0xd9c   :  { %v920_v45 = vpop.permute.xlu1 %919 }
 0xd9d   :  { %1833 = vmatpush3.bf16.msra.mxu1 %v2082_v2  ;;  %1827 = vmatmul.mubr.msk.bf16.vlgmr.msra.gmra.mxu0 %vm66_vm1, %v920_v45 }
 0xd9e   :  { %1846 = vmatprep.subr.bf16.mxu1 %v2022_v0  ;;  %1839 = vmatpush3.bf16.msra.mxu0 %v2100_v20 }
 0xd9f   :  { %1840 = vmatprep.subr.bf16.mxu0 %v2022_v0  ;;  %1842 = vmatprep.mubr.msk.bf16.mxu0 %vm2023_vm0, %v2022_v0 }
 0xda0   :  { %1835 = vmatmul.mubr.msk.bf16.vlgmr.msra.gmra.mxu1 %vm66_vm1, %v920_v45 }
 0xda1   :  { %1847 = vmatpush3.bf16.msra.mxu1 %v2111_v22  ;;  %1850 = vmatprep.mubr.msk.bf16.mxu1 %vm2023_vm0, %v2022_v0 }
 0xda2   :  { %1848 = vmatprep.subr.bf16.mxu1 %v2022_v0  ;;  %1841 = vmatpush3.bf16.msra.mxu0 %v2105_v21 }
 0xda3   :  { %1854 = vmatprep.subr.bf16.mxu0 %v2022_v0 }
 0xda5   :  { %1849 = vmatpush3.bf16.msra.mxu1 %v2118_v23 }
 0xda6   :  { %1862 = vmatprep.subr.bf16.mxu1 %v2022_v0 }
 0xe58   :  { %v912_v46 = vpop.f32.mrf.mxu1 }
 0xe5a   :  { %v1820_v47 = vpop.f32.mrf.mxu1 }
 0xe5c   :  { %v915_v48 = vpop.f32.mrf.mxu1 }
 0xe5d   :  { %v958_v49 = vpop.f32.mrf.mxu0 }
 0xe5e   :  { %v1821_v50 = vpop.f32.mrf.mxu1  ;;  %v959_v51 = vadd.f32 %v958_v49, %v912_v46 }
 0xe5f   :  { %v1828_v53 = vpop.f32.mrf.mxu0 }
 0xe60   :  { %v964_v54 = vadd.f32 %v2153_v34, %v959_v51  ;;  %v1021_v55 = vpop.f32.mrf.mxu1 }
 0xe61   :  { %v1027_v56 = vadd.f32 %v1021_v55, %v51_v52  ;;  %v961_v57 = vpop.f32.mrf.mxu0 }
 0xe62   :  { %1977 = vtanh.f32 %v964_v54  ;;  %v1836_v58 = vpop.f32.mrf.mxu1  ;;  %v965_v62 = vmul.f32 0.5, %v964_v54 }
 0xe63   :  { %1979 = vtanh.f32 %v1027_v56  ;;  %v1829_v59 = vpop.f32.mrf.mxu0  ;;  %v1028_v4 = vmul.f32 0.5, %v1027_v56 }
 0xe64   :  { %v1024_v60 = vpop.f32.mrf.mxu1  ;;  %1981 = vtanh.f32 %v965_v62 }
 0xe65   :  { %1983 = vtanh.f32 %v1028_v4 }
 0xe66   :  { %v1837_v61 = vpop.f32.mrf.mxu1 }
 0xe6f   :  { %v1978_v63 = vpop.eup %1977 }
 0xe70   :  { %v1980_v3 = vpop.eup %1979  ;;  %972 = vrot.lane.b32.xlu0 %v1978_v63, %s2025_s30 }
 0xe71   :  { %1035 = vrot.lane.b32.xlu1 %v1980_v3, %s2025_s30  ;;  %v1982_v5 = vpop.eup %1981 }
 0xe72   :  { %v1984_v6 = vpop.eup %1983  ;;  %v967_v7 = vadd.f32 1.0, %v1982_v5 }
 0xe73   :  { %v1030_v8 = vadd.f32 1.0, %v1984_v6 }
 0xe74   :  { %v968_v9 = vmul.f32 0.5, %v967_v7 }
 0xe75   :  { %v1031_v10 = vmul.f32 0.5, %v1030_v8 }
 0xe76   :  { %v970_v15 = vmul.f32 %v968_v9, %v2283_v31 }
 0xe77   :  { %v1033_v16 = vmul.f32 %v1031_v10, %v2287_v35 }
 0xee2   :  { %v973_v11 = vpop.permute.xlu0 %972 }
 0xee3   :  { %v1036_v12 = vpop.permute.xlu1 %1035  ;;  %v975_v13 = vmul.f32 %v973_v11, %v968_v9 }
 0xee4   :  { %v1038_v14 = vmul.f32 %v1036_v12, %v1031_v10 }
 0xee5   :  { %977 = vrot.lane.b32.xlu0 %v975_v13, %s2026_s8 }
 0xee6   :  { %1040 = vrot.lane.b32.xlu1 %v1038_v14, %s2026_s8 }
 0xf57   :  { %v978_v17 = vpop.permute.xlu0 %977 }
 0xf58   :  { %v1041_v18 = vpop.permute.xlu1 %1040  ;;  %v2325_v19 = vadd.f32 %v978_v17, %v970_v15 }
 0xf59   :  { %v2327_v24 = vadd.f32 %v1041_v18, %v1033_v16  ;;  %v2019_v18 = vld [vmem:[%s2439_s2 + $0x8] sm:$0xff]  }
 0xf5a   :  { %1985 = vtanh.f32 %v2325_v19 }
 0xf5b   :  { %1987 = vtanh.f32 %v2327_v24 }
 0xf67   :  { %v1986_v25 = vpop.eup %1985 }
 0xf68   :  { %v1988_v26 = vpop.eup %1987  ;;  %983 = vrot.lane.b32.xlu0 %v1986_v25, %s2025_s30 }
 0xf69   :  { %1046 = vrot.lane.b32.xlu1 %v1988_v26, %s2025_s30 }
 0xfda   :  { %v984_v27 = vpop.permute.xlu0 %983 }
 0xfdb   :  { %v1047_v28 = vpop.permute.xlu1 %1046  ;;  %v986_v29 = vmul.f32 %v984_v27, %v968_v9 }
 0xfdc   :  { %v1049_v30 = vmul.f32 %v1047_v28, %v1031_v10 }
 0xfdd   :  { %v1051_v31 = vpack.c.bf16 %v986_v29, %v986_v29 }
 0xfde   :  { %v1050_v32 = vpack.c.bf16 %v1049_v30, %v1049_v30 }
 0xfdf   :  { %1053 = vrot.lane.b32.xlu0 %v1051_v31, %s2026_s8 }
 0xfe0   :  { %1099 = vrot.lane.b32.xlu1 %v1050_v32, %s2026_s8 }
0x1051   :  { %v1054_v33 = vpop.permute.xlu0 %1053 }
0x1052   :  { %v1100_v35 = vpop.permute.xlu1 %1099  ;;  %1843 = vmatmul.mubr.msk.bf16.vlgmr.msra.gmra.mxu0 %vm66_vm1, %v1054_v33 }
0x1053   :  { %1851 = vmatmul.mubr.msk.bf16.vlgmr.msra.gmra.mxu1 %vm66_vm1, %v1100_v35  ;;  %1855 = vmatpush3.bf16.msra.mxu0 %v2071_v1 }
0x1054   :  { %1856 = vmatprep.subr.bf16.mxu0 %v2022_v0  ;;  %1858 = vmatprep.mubr.msk.bf16.mxu0 %vm2023_vm0, %v2022_v0 }
0x1055   :  { %1863 = vmatpush3.bf16.msra.mxu1 %v2100_v20  ;;  %1866 = vmatprep.mubr.msk.bf16.mxu1 %vm2023_vm0, %v2022_v0 }
0x1056   :  { %1864 = vmatprep.subr.bf16.mxu1 %v2022_v0 }
0x1057   :  { %1857 = vmatpush3.bf16.msra.mxu0 %v2082_v2 }
0x1058   :  { %1870 = vmatprep.subr.bf16.mxu0 %v2022_v0 }
0x1059   :  { %1865 = vmatpush3.bf16.msra.mxu1 %v2105_v21 }
0x105a   :  { %1859 = vmatmul.mubr.msk.bf16.vlgmr.msra.gmra.mxu0 %vm66_vm1, %v1100_v35  ;;  %1878 = vmatprep.subr.bf16.mxu1 %v2022_v0 }
0x105b   :  { %1871 = vmatpush3.bf16.msra.mxu0 %v2111_v22  ;;  %1874 = vmatprep.mubr.msk.bf16.mxu0 %vm2023_vm0, %v2022_v0 }
0x105c   :  { %1872 = vmatprep.subr.bf16.mxu0 %v2022_v0 }
0x105f   :  { %1873 = vmatpush3.bf16.msra.mxu0 %v2118_v23 }
0x1060   :  { %1886 = vmatprep.subr.bf16.mxu0 %v2022_v0 }
0x1112   :  { %v1092_v1 = vpop.f32.mrf.mxu0 }
0x1113   :  { %v1138_v2 = vpop.f32.mrf.mxu1 }
0x1114   :  { %v1139_v36 = vadd.f32 %v1138_v2, %v1092_v1  ;;  %v1844_v37 = vpop.f32.mrf.mxu0 }
0x1115   :  { %v1852_v38 = vpop.f32.mrf.mxu1 }
0x1116   :  { %v1144_v39 = vadd.f32 %v2153_v34, %v1139_v36  ;;  %v1095_v40 = vpop.f32.mrf.mxu0 }
0x1117   :  { %v1141_v41 = vpop.f32.mrf.mxu1 }
0x1118   :  { %1989 = vtanh.f32 %v1144_v39  ;;  %v1845_v42 = vpop.f32.mrf.mxu0  ;;  %v1145_v52 = vmul.f32 0.5, %v1144_v39 }
0x1119   :  { %v1853_v44 = vpop.f32.mrf.mxu1 }
0x111a   :  { %v1201_v45 = vpop.f32.mrf.mxu0 }
0x111b   :  { %v1207_v46 = vadd.f32 %v1201_v45, %v52_v43 }
0x111c   :  { %v1860_v47 = vpop.f32.mrf.mxu0 }
0x111d   :  { %1991 = vtanh.f32 %v1207_v46  ;;  %v1208_v53 = vmul.f32 0.5, %v1207_v46 }
0x111e   :  { %v1204_v48 = vpop.f32.mrf.mxu0  ;;  %1993 = vtanh.f32 %v1145_v52 }
0x111f   :  { %1995 = vtanh.f32 %v1208_v53 }
0x1120   :  { %v1861_v49 = vpop.f32.mrf.mxu0 }
0x1125   :  { %v1990_v50 = vpop.eup %1989 }
0x1126   :  { %1152 = vrot.lane.b32.xlu0 %v1990_v50, %s2025_s30 }
0x112a   :  { %v1992_v51 = vpop.eup %1991 }
0x112b   :  { %1215 = vrot.lane.b32.xlu1 %v1992_v51, %s2025_s30  ;;  %v1994_v54 = vpop.eup %1993 }
0x112c   :  { %v1147_v55 = vadd.f32 1.0, %v1994_v54  ;;  %v1996_v56 = vpop.eup %1995 }
0x112d   :  { %v1210_v59 = vadd.f32 1.0, %v1996_v56 }
0x112e   :  { %v1148_v57 = vmul.f32 0.5, %v1147_v55 }
0x112f   :  { %v1211_v61 = vmul.f32 0.5, %v1210_v59 }
0x1130   :  { %v1150_v62 = vmul.f32 %v1148_v57, %v2325_v19 }
0x1131   :  { %v1213_v6 = vmul.f32 %v1211_v61, %v2327_v24  ;;  %v2020_v24 = vld [vmem:[%s2439_s2] sm:$0xff]  }
0x1198   :  { %v1153_v58 = vpop.permute.xlu0 %1152 }
0x1199   :  { %v1155_v60 = vmul.f32 %v1153_v58, %v1148_v57 }
0x119b   :  { %1157 = vrot.lane.b32.xlu0 %v1155_v60, %s2026_s8 }
0x119d   :  { %v1216_v63 = vpop.permute.xlu1 %1215 }
0x119e   :  { %v1218_v3 = vmul.f32 %v1216_v63, %v1211_v61 }
0x11a0   :  { %1220 = vrot.lane.b32.xlu1 %v1218_v3, %s2026_s8 }
0x120d   :  { %v1158_v4 = vpop.permute.xlu0 %1157 }
0x120e   :  { %v2365_v5 = vadd.f32 %v1158_v4, %v1150_v62 }
0x1210   :  { %1997 = vtanh.f32 %v2365_v5 }
0x1212   :  { %v1221_v7 = vpop.permute.xlu1 %1220 }
0x1213   :  { %v2369_v8 = vadd.f32 %v1221_v7, %v1213_v6 }
0x1215   :  { %1999 = vtanh.f32 %v2369_v8 }
0x121d   :  { %v1998_v9 = vpop.eup %1997 }
0x121e   :  { %1163 = vrot.lane.b32.xlu0 %v1998_v9, %s2025_s30  ;;  %v2021_v9 = vld [vmem:[%s2443_s4] ss:$0 sm:$0xff] }
0x1222   :  { %v2000_v10 = vpop.eup %1999 }
0x1223   :  { %1226 = vrot.lane.b32.xlu1 %v2000_v10, %s2025_s30 }
0x1290   :  { %v1164_v11 = vpop.permute.xlu0 %1163 }
0x1291   :  { %v1166_v12 = vmul.f32 %v1164_v11, %v1148_v57 }
0x1293   :  { %v1231_v13 = vpack.c.bf16 %v1166_v12, %v1166_v12 }
0x1295   :  { %1233 = vrot.lane.b32.xlu0 %v1231_v13, %s2026_s8  ;;  %v1227_v14 = vpop.permute.xlu1 %1226 }
0x1296   :  { %v1229_v15 = vmul.f32 %v1227_v14, %v1211_v61 }
0x1298   :  { %v1230_v16 = vpack.c.bf16 %v1229_v15, %v1229_v15 }
0x129a   :  { %1279 = vrot.lane.b32.xlu1 %v1230_v16, %s2026_s8 }
0x1307   :  { %v1234_v17 = vpop.permute.xlu0 %1233 }
0x1308   :  { %1867 = vmatmul.mubr.msk.bf16.vlgmr.msra.gmra.mxu1 %vm66_vm1, %v1234_v17 }
0x1309   :  { %1879 = vmatpush3.bf16.msra.mxu1 %v2019_v18  ;;  %1882 = vmatprep.mubr.msk.bf16.mxu1 %vm2023_vm0, %v2022_v0 }
0x130a   :  { %1880 = vmatprep.subr.bf16.mxu1 %v2022_v0 }
0x130c   :  { %v1280_v19 = vpop.permute.xlu1 %1279 }
0x130d   :  { %1881 = vmatpush3.bf16.msra.mxu1 %v2020_v24  ;;  %1875 = vmatmul.mubr.msk.bf16.vlgmr.msra.gmra.mxu0 %vm66_vm1, %v1280_v19 }
0x130e   :  { %1894 = vmatprep.subr.bf16.mxu1 %v2022_v0  ;;  %1887 = vmatpush3.bf16.msra.mxu0 %v2100_v20 }
0x130f   :  { %1888 = vmatprep.subr.bf16.mxu0 %v2022_v0  ;;  %1890 = vmatprep.mubr.msk.bf16.mxu0 %vm2023_vm0, %v2022_v0 }
0x1310   :  { %1883 = vmatmul.mubr.msk.bf16.vlgmr.msra.gmra.mxu1 %vm66_vm1, %v1280_v19 }
0x1311   :  { %1895 = vmatpush3.bf16.msra.mxu1 %v2111_v22  ;;  %1898 = vmatprep.mubr.msk.bf16.mxu1 %vm2023_vm0, %v2022_v0  ;;  %v53_v22 = vld [vmem:[%s2440_s0 + $0x38] sm:$0xff] }
0x1312   :  { %1896 = vmatprep.subr.bf16.mxu1 %v2022_v0  ;;  %1889 = vmatpush3.bf16.msra.mxu0 %v2105_v21 }
0x1313   :  { %1902 = vmatprep.subr.bf16.mxu0 %v2022_v0 }
0x1315   :  { %1897 = vmatpush3.bf16.msra.mxu1 %v2118_v23 }
0x13c8   :  { %v1272_v20 = vpop.f32.mrf.mxu1 }
0x13ca   :  { %v1868_v25 = vpop.f32.mrf.mxu1 }
0x13cc   :  { %v1275_v26 = vpop.f32.mrf.mxu1 }
0x13cd   :  { %v1318_v27 = vpop.f32.mrf.mxu0 }
0x13ce   :  { %v1869_v28 = vpop.f32.mrf.mxu1  ;;  %v1319_v29 = vadd.f32 %v1318_v27, %v1272_v20 }
0x13cf   :  { %v1876_v30 = vpop.f32.mrf.mxu0  ;;  %v1921_v28 = vld [vmem:[%s2444_s5 + $0x8] sm:$0xff]  }
0x13d0   :  { %v1324_v31 = vadd.f32 %v2153_v34, %v1319_v29  ;;  %v1381_v32 = vpop.f32.mrf.mxu1  ;;  %v1922_v29 = vld [vmem:[%s2444_s5] sm:$0xff]  }
0x13d1   :  { %v1387_v33 = vadd.f32 %v1381_v32, %v53_v22  ;;  %v1321_v21 = vpop.f32.mrf.mxu0 }
0x13d2   :  { %2001 = vtanh.f32 %v1324_v31  ;;  %v1884_v35 = vpop.f32.mrf.mxu1  ;;  %v1325_v38 = vmul.f32 0.5, %v1324_v31  ;;  %v1631_v21 = vld [vmem:[%s2445_s6] ss:$0 sm:$0xff] }
0x13d3   :  { %2003 = vtanh.f32 %v1387_v33  ;;  %v1877_v23 = vpop.f32.mrf.mxu0  ;;  %v1388_v39 = vmul.f32 0.5, %v1387_v33 }
0x13d4   :  { %v1384_v1 = vpop.f32.mrf.mxu1  ;;  %2005 = vtanh.f32 %v1325_v38 }
0x13d5   :  { %2007 = vtanh.f32 %v1388_v39 }
0x13d6   :  { %v1885_v2 = vpop.f32.mrf.mxu1 }
0x13df   :  { %v2002_v36 = vpop.eup %2001 }
0x13e0   :  { %v2004_v37 = vpop.eup %2003  ;;  %1332 = vrot.lane.b32.xlu0 %v2002_v36, %s2025_s30 }
0x13e1   :  { %1395 = vrot.lane.b32.xlu1 %v2004_v37, %s2025_s30  ;;  %v2006_v34 = vpop.eup %2005 }
0x13e2   :  { %v2008_v40 = vpop.eup %2007  ;;  %v1327_v41 = vadd.f32 1.0, %v2006_v34 }
0x13e3   :  { %v1390_v42 = vadd.f32 1.0, %v2008_v40 }
0x13e4   :  { %v1328_v43 = vmul.f32 0.5, %v1327_v41 }
0x13e5   :  { %v1391_v44 = vmul.f32 0.5, %v1390_v42 }
0x13e6   :  { %v1330_v49 = vmul.f32 %v1328_v43, %v2365_v5 }
0x13e7   :  { %v1393_v50 = vmul.f32 %v1391_v44, %v2369_v8 }
0x1452   :  { %v1333_v45 = vpop.permute.xlu0 %1332 }
0x1453   :  { %v1396_v46 = vpop.permute.xlu1 %1395  ;;  %v1335_v47 = vmul.f32 %v1333_v45, %v1328_v43 }
0x1454   :  { %v1398_v48 = vmul.f32 %v1396_v46, %v1391_v44 }
0x1455   :  { %1337 = vrot.lane.b32.xlu0 %v1335_v47, %s2026_s8 }
0x1456   :  { %1400 = vrot.lane.b32.xlu1 %v1398_v48, %s2026_s8 }
0x14c7   :  { %v1338_v51 = vpop.permute.xlu0 %1337 }
0x14c8   :  { %v1401_v52 = vpop.permute.xlu1 %1400  ;;  %v1340_v53 = vadd.f32 %v1338_v51, %v1330_v49 }
0x14c9   :  { %v1403_v54 = vadd.f32 %v1401_v52, %v1393_v50 }
0x14ca   :  { %2009 = vtanh.f32 %v1340_v53 }
0x14cb   :  { %2011 = vtanh.f32 %v1403_v54 }
0x14d7   :  { %v2010_v55 = vpop.eup %2009 }
0x14d8   :  { %v2012_v56 = vpop.eup %2011  ;;  %1343 = vrot.lane.b32.xlu0 %v2010_v55, %s2025_s30 }
0x14d9   :  { %1406 = vrot.lane.b32.xlu1 %v2012_v56, %s2025_s30 }
0x154a   :  { %v1344_v57 = vpop.permute.xlu0 %1343 }
0x154b   :  { %v1407_v58 = vpop.permute.xlu1 %1406  ;;  %v1346_v59 = vmul.f32 %v1344_v57, %v1328_v43 }
0x154c   :  { %v1409_v60 = vmul.f32 %v1407_v58, %v1391_v44 }
0x154d   :  { %v1411_v61 = vpack.c.bf16 %v1346_v59, %v1346_v59 }
0x154e   :  { %v1410_v63 = vpack.c.bf16 %v1409_v60, %v1409_v60 }
0x154f   :  { %1413 = vrot.lane.b32.xlu0 %v1411_v61, %s2026_s8 }
0x1550   :  { %1459 = vrot.lane.b32.xlu1 %v1410_v63, %s2026_s8 }
0x15c1   :  { %v1414_v3 = vpop.permute.xlu0 %1413 }
0x15c2   :  { %v1460_v62 = vpop.permute.xlu1 %1459  ;;  %1891 = vmatmul.mubr.msk.bf16.vlgmr.msra.gmra.mxu0 %vm66_vm1, %v1414_v3 }
0x15c3   :  { %1899 = vmatmul.mubr.msk.bf16.vlgmr.msra.gmra.mxu1 %vm66_vm1, %v1460_v62  ;;  %1906 = vmatprep.mubr.msk.bf16.mxu0 %vm2023_vm0, %v2022_v0 }
0x15c4   :  { %1903 = vmatpush3.bf16.msra.mxu0 %v1921_v28 }
0x15c5   :  { %1904 = vmatprep.subr.bf16.mxu0 %v2022_v0 }
0x15c8   :  { %1905 = vmatpush3.bf16.msra.mxu0 %v1922_v29 }
0x1682   :  { %v1452_v4 = vpop.f32.mrf.mxu0 }
0x1683   :  { %v1498_v5 = vpop.f32.mrf.mxu1 }
0x1684   :  { %v1499_v6 = vadd.f32 %v1498_v5, %v1452_v4  ;;  %v1892_v7 = vpop.f32.mrf.mxu0 }
0x1685   :  { %v1900_v8 = vpop.f32.mrf.mxu1 }
0x1686   :  { %v1504_v10 = vadd.f32 %v2021_v9, %v1499_v6  ;;  %v1455_v11 = vpop.f32.mrf.mxu0 }
0x1687   :  { %v1501_v12 = vpop.f32.mrf.mxu1 }
0x1688   :  { %2013 = vtanh.f32 %v1504_v10  ;;  %v1893_v13 = vpop.f32.mrf.mxu0  ;;  %v1505_v16 = vmul.f32 0.5, %v1504_v10 }
0x1689   :  { %v1901_v14 = vpop.f32.mrf.mxu1 }
0x168a   :  { %2015 = vtanh.f32 %v1505_v16 }
0x1695   :  { %v2014_v15 = vpop.eup %2013 }
0x1696   :  { %1512 = vrot.lane.b32.xlu0 %v2014_v15, %s2025_s30 }
0x1697   :  { %v2016_v17 = vpop.eup %2015 }
0x1698   :  { %v1507_v18 = vadd.f32 1.0, %v2016_v17 }
0x169a   :  { %v1508_v19 = vmul.f32 0.5, %v1507_v18 }
0x169c   :  { %v1510_v25 = vmul.f32 %v1508_v19, %v1340_v53 }
0x1708   :  { %v1513_v24 = vpop.permute.xlu0 %1512 }
0x1709   :  { %v1515_v20 = vmul.f32 %v1513_v24, %v1508_v19 }
0x170b   :  { %1517 = vrot.lane.b32.xlu1 %v1515_v20, %s2026_s8 }
0x177d   :  { %v1518_v26 = vpop.permute.xlu1 %1517 }
0x177e   :  { %v1520_v27 = vadd.f32 %v1518_v26, %v1510_v25 }
0x1780   :  { %2017 = vtanh.f32 %v1520_v27 }
0x178d   :  { %v2018_v22 = vpop.eup %2017 }
0x178e   :  { %1523 = vrot.lane.b32.xlu0 %v2018_v22, %s2025_s30 }
0x1800   :  { %v1524_v30 = vpop.permute.xlu0 %1523 }
0x1801   :  { %v1526_v31 = vmul.f32 %v1524_v30, %v1508_v19 }
0x1803   :  { %v1527_v32 = vpack.c.bf16 %v1526_v31, %v1526_v31 }
0x1805   :  { %1540 = vrot.lane.b32.xlu1 %v1527_v32, %s2026_s8 }
0x1877   :  { %v1541_v33 = vpop.permute.xlu1 %1540 }
0x1878   :  { %1907 = vmatmul.mubr.msk.bf16.vlgmr.msra.gmra.mxu0 %vm66_vm1, %v1541_v33 }
0x1938   :  { %v1591_v35 = vpop.f32.mrf.mxu0 }
0x1939   :  { %v1592_v23 = vadd.f32 %v1631_v21, %v1591_v35 }
0x193a   :  { %v1908_v1 = vpop.f32.mrf.mxu0 }
0x193b   :  { %1597 = vst [vmem:[%s2446_s7] sm:$0xff] %v1592_v23 }
0x193c   :  { %v1594_v0 = vpop.f32.mrf.mxu0 }
0x193e   :  { %v1909_v2 = vpop.f32.mrf.mxu0 }

</bundles_post_ra>
